<compile_context>
chip_gen: v7x
topology: tpu7x:2x2x1
jax: 0.10.0
libtpu: 0.0.40
codegen_flags: <defaults>
</compile_context>

<pallas_src>
import functools

import jax
import jax.numpy as jnp
from jax.experimental import pallas as pl
from jax.experimental.pallas import tpu as pltpu

NEG_INF = -9.0e15
LANE = 128


def _pad_to_lane(c):
    return max(LANE, ((c + LANE - 1) // LANE) * LANE)


# ----------------------------- in-kernel helpers -----------------------------
def _elu(x):
    # exp only on the non-positive branch (no inf in the dead branch).
    return jnp.where(x > 0, x, jnp.exp(jnp.minimum(x, 0.0)) - 1.0)


def _mask_bias(adj_ref):
    """Expand the streamed adjacency block to an additive f32 bias (fused)."""
    if adj_ref.dtype == jnp.int8:
        # 0/1 int8 -> {NEG_INF, 0} with pure arithmetic (no compare/select).
        return (adj_ref[...].astype(jnp.float32) - 1.0) * (-NEG_INF)
    return adj_ref[...].astype(jnp.float32)   # bf16 additive-bias fallback


# --------------------------------- kernels -----------------------------------
def ggat_layer_a_kernel(fsrc_ref, fdst_ref, wh_ref, adj_ref, out_ref,
                        m_ref, l_ref, acc_ref, *, n_heads, c_pad, alpha):
    """Multi-head GAT attention over one (row-tile, column-block) grid cell.

    Online softmax: per-head m/l/acc scratch persists across the inner column
    axis; the averaged ELU(head) output is written once at the last block.
    Wh and the attention scores are precomputed in the wrapper, so the kernel
    is only mask + softmax + the attn@Wh matmul.
    """
    # TODO(synk): input/attention dropout omitted (eval-mode identity).
    j = pl.program_id(1)

    @pl.when(j == 0)
    def _init():
        m_ref[...] = jnp.full_like(m_ref, -jnp.inf)
        l_ref[...] = jnp.zeros_like(l_ref)
        acc_ref[...] = jnp.zeros_like(acc_ref)

    bias = _mask_bias(adj_ref)                 # (T, K) f32, reused by all heads
    fsrc = fsrc_ref[...]                       # (T, H) f32
    fdst = fdst_ref[...]                       # (H, K) f32
    wh = wh_ref[...]                           # (K, H*Cp) bf16

    for h in range(n_heads):                   # static unroll (H is small)
        e = fsrc[:, h:h + 1] + fdst[h:h + 1, :]            # (T, K)
        e = jnp.maximum(e, alpha * e) + bias                # LeakyReLU + mask
        m_prev = m_ref[h]                                   # (T, 1)
        m_new = jnp.maximum(m_prev, jnp.max(e, axis=-1, keepdims=True))
        corr = jnp.exp(m_prev - m_new)
        p = jnp.exp(e - m_new)                              # (T, K)
        l_ref[h] = corr * l_ref[h] + jnp.sum(p, axis=-1, keepdims=True)
        acc_ref[h] = corr * acc_ref[h] + jnp.dot(
            p.astype(jnp.bfloat16), wh[:, h * c_pad:(h + 1) * c_pad],
            preferred_element_type=jnp.float32)             # (T, Cp)
        m_ref[h] = m_new

    @pl.when(j == pl.num_programs(1) - 1)
    def _finalize():
        out = jnp.zeros(out_ref.shape, jnp.float32)
        for h in range(n_heads):
            inv = pl.reciprocal(jnp.maximum(l_ref[h], 1e-20), approx=True)
            out = out + _elu(acc_ref[h] * inv)
        out_ref[...] = (out * (1.0 / n_heads)).astype(out_ref.dtype)


def ggat_layer_gru_kernel(fsrc_ref, fdst_ref, wh_ref, adj_ref, h_ref,
                          wih_ref, whh_ref, bih_ref, bhh_ref, out_ref,
                          m_ref, l_ref, acc_ref, *, c_pad, alpha):
    """Single-head GAT attention (online softmax over column blocks) gated by
    the shared public GRU cell at the final column block."""
    j = pl.program_id(1)

    @pl.when(j == 0)
    def _init():
        m_ref[...] = jnp.full_like(m_ref, -jnp.inf)
        l_ref[...] = jnp.zeros_like(l_ref)
        acc_ref[...] = jnp.zeros_like(acc_ref)

    bias = _mask_bias(adj_ref)                              # (T, K) f32
    e = fsrc_ref[...] + fdst_ref[...]                       # (T,1)+(1,K)->(T,K)
    e = jnp.maximum(e, alpha * e) + bias                    # LeakyReLU + mask
    m_prev = m_ref[...]
    m_new = jnp.maximum(m_prev, jnp.max(e, axis=-1, keepdims=True))
    corr = jnp.exp(m_prev - m_new)
    p = jnp.exp(e - m_new)
    l_ref[...] = corr * l_ref[...] + jnp.sum(p, axis=-1, keepdims=True)
    acc_ref[...] = corr * acc_ref[...] + jnp.dot(
        p.astype(jnp.bfloat16), wh_ref[...], preferred_element_type=jnp.float32)
    m_ref[...] = m_new

    @pl.when(j == pl.num_programs(1) - 1)
    def _finalize():
        inv = pl.reciprocal(jnp.maximum(l_ref[...], 1e-20), approx=True)
        g = _elu(acc_ref[...] * inv)                        # (T, Cp) GAT output
        h_prev = h_ref[...].astype(jnp.float32)             # (T, Cp)
        # Shared public GRUCell (PyTorch convention); gates packed [r | z | n],
        # each gate in its own 128-lane slot so slicing stays lane-aligned.
        gi = jnp.dot(g.astype(jnp.bfloat16), wih_ref[...],
                     preferred_element_type=jnp.float32) + bih_ref[...]
        gh = jnp.dot(h_ref[...].astype(jnp.bfloat16), whh_ref[...],
                     preferred_element_type=jnp.float32) + bhh_ref[...]
        C = c_pad
        r = jax.nn.sigmoid(gi[:, 0:C] + gh[:, 0:C])
        z = jax.nn.sigmoid(gi[:, C:2 * C] + gh[:, C:2 * C])
        n = jnp.tanh(gi[:, 2 * C:3 * C] + r * gh[:, 2 * C:3 * C])
        out_ref[...] = ((1.0 - z) * n + z * h_prev).astype(out_ref.dtype)


# ------------------------------ launch helpers --------------------------------
def _pick_tiles(n, tile_n, tile_k):
    if tile_n is None:
        tile_n = n
        for cand in (256, 128, 64, 32, 16, 8):       # keep >= 2 row tiles (v7x)
            if cand <= max(8, n // 2) and n % cand == 0:
                tile_n = cand
                break
    if tile_k is None:
        tile_k = n
        for cand in (512, 256, 128):
            if cand <= n and n % cand == 0:
                tile_k = cand
                break
    return tile_n, tile_k


def _vmem_limit_bytes(tile_n, tile_k, n_heads, c_pad):
    f32, bf16 = 4, 2
    resident = 2 * c_pad * 3 * c_pad * bf16 + 2 * 3 * c_pad * f32      # GRU wts
    pipelined = 2 * (tile_n * n_heads * f32                            # f_src
                     + tile_k * n_heads * f32                          # f_dst
                     + tile_k * n_heads * c_pad * bf16                 # Wh block
                     + tile_n * tile_k                                  # adj blk
                     + tile_n * c_pad * (bf16 + f32))                  # h + out
    scratch = n_heads * tile_n * (c_pad + 2) * f32                     # m/l/acc
    temps = 8 * tile_n * tile_k * f32 + 8 * tile_n * 3 * c_pad * f32
    est = resident + pipelined + scratch + temps
    try:
        cap = getattr(pltpu.get_tpu_info(), "vmem_capacity_bytes",
                      128 * 1024 * 1024)
    except Exception:
        cap = 128 * 1024 * 1024
    # Leave headroom for compiler-internal scratch: <= 3/4 of physical VMEM
    # (v7x 64 MiB -> <=48 MiB; v5e/v6e 128 MiB -> up to 96 MiB).
    return int(min(max(4 * est, 32 * 1024 * 1024), (cap * 3) // 4))


def _compiler_params(vmem_bytes):
    return pltpu.CompilerParams(dimension_semantics=("parallel", "arbitrary"),
                                vmem_limit_bytes=vmem_bytes)


def _run_layer_a(fsrc, fdst_t, wh, adj_enc, *, n_heads, c_pad, alpha,
                 tile_n, tile_k, vmem_bytes, out_dtype):
    n = fsrc.shape[0]
    kernel = functools.partial(ggat_layer_a_kernel, n_heads=n_heads,
                               c_pad=c_pad, alpha=alpha)
    cost = pl.CostEstimate(
        flops=int(n_heads * (6 * n * n + 2 * n * n * c_pad)),
        transcendentals=int(n_heads * n * n),
        bytes_accessed=int(adj_enc.size * adj_enc.dtype.itemsize
                           + n * n_heads * c_pad * 2 + n * n_heads * 8
                           + n * c_pad * 2))
    return pl.pallas_call(
        kernel,
        out_shape=jax.ShapeDtypeStruct((n, c_pad), out_dtype),
        grid=(n // tile_n, n // tile_k),
        in_specs=[
            pl.BlockSpec((tile_n, n_heads), lambda i, j: (i, 0)),        # f_src
            pl.BlockSpec((n_heads, tile_k), lambda i, j: (0, j)),        # f_dst^T
            pl.BlockSpec((tile_k, n_heads * c_pad), lambda i, j: (j, 0)),  # Wh
            pl.BlockSpec((tile_n, tile_k), lambda i, j: (i, j)),         # adj
        ],
        out_specs=pl.BlockSpec((tile_n, c_pad), lambda i, j: (i, 0)),
        scratch_shapes=[
            pltpu.VMEM((n_heads, tile_n, 1), jnp.float32),               # m
            pltpu.VMEM((n_heads, tile_n, 1), jnp.float32),               # l
            pltpu.VMEM((n_heads, tile_n, c_pad), jnp.float32),           # acc
        ],
        compiler_params=_compiler_params(vmem_bytes),
        cost_estimate=cost,
    )(fsrc, fdst_t, wh, adj_enc)


def _run_layer_gru(fsrc, fdst_t, wh, adj_enc, h_prev, wih, whh, bih, bhh, *,
                   c_pad, alpha, tile_n, tile_k, vmem_bytes, out_dtype):
    n = h_prev.shape[0]
    kernel = functools.partial(ggat_layer_gru_kernel, c_pad=c_pad, alpha=alpha)
    cost = pl.CostEstimate(
        flops=int(6 * n * n + 2 * n * n * c_pad + 4 * n * c_pad * 3 * c_pad),
        transcendentals=int(n * n + 3 * n * c_pad),
        bytes_accessed=int(adj_enc.size * adj_enc.dtype.itemsize
                           + 3 * n * c_pad * 2 + 2 * c_pad * 3 * c_pad * 2))
    return pl.pallas_call(
        kernel,
        out_shape=jax.ShapeDtypeStruct((n, c_pad), out_dtype),
        grid=(n // tile_n, n // tile_k),
        in_specs=[
            pl.BlockSpec((tile_n, 1), lambda i, j: (i, 0)),              # f_src
            pl.BlockSpec((1, tile_k), lambda i, j: (0, j)),              # f_dst^T
            pl.BlockSpec((tile_k, c_pad), lambda i, j: (j, 0)),          # Wh
            pl.BlockSpec((tile_n, tile_k), lambda i, j: (i, j)),         # adj
            pl.BlockSpec((tile_n, c_pad), lambda i, j: (i, 0)),          # h_prev
            pl.BlockSpec((c_pad, 3 * c_pad), lambda i, j: (0, 0)),       # W_ih
            pl.BlockSpec((c_pad, 3 * c_pad), lambda i, j: (0, 0)),       # W_hh
            pl.BlockSpec((1, 3 * c_pad), lambda i, j: (0, 0)),           # b_ih
            pl.BlockSpec((1, 3 * c_pad), lambda i, j: (0, 0)),           # b_hh
        ],
        out_specs=pl.BlockSpec((tile_n, c_pad), lambda i, j: (i, 0)),
        scratch_shapes=[
            pltpu.VMEM((tile_n, 1), jnp.float32),                        # m
            pltpu.VMEM((tile_n, 1), jnp.float32),                        # l
            pltpu.VMEM((tile_n, c_pad), jnp.float32),                    # acc
        ],
        compiler_params=_compiler_params(vmem_bytes),
        cost_estimate=cost,
    )(fsrc, fdst_t, wh, adj_enc, h_prev, wih, whh, bih, bhh)


# ------------------------- wrapper-side packing / padding ---------------------
def prepare_params(raw, *, n_class, n_heads, c_pad):
    """Zero-pad the class dim to 128 lanes and batch layer-a heads."""
    C, Cp, H = n_class, c_pad, n_heads
    F = raw["W_a"].shape[1]

    wa = jnp.zeros((F, H * Cp), jnp.float32)
    asrc = jnp.zeros((H * Cp, H), jnp.float32)
    adst = jnp.zeros((H * Cp, H), jnp.float32)
    for h in range(H):
        wa = wa.at[:, h * Cp:h * Cp + C].set(raw["W_a"][h])
        asrc = asrc.at[h * Cp:h * Cp + C, h].set(raw["a_src_a"][h, :, 0])
        adst = adst.at[h * Cp:h * Cp + C, h].set(raw["a_dst_a"][h, :, 0])

    def pad_w(w):
        return jnp.zeros((Cp, Cp), jnp.float32).at[:C, :C].set(w)

    def pad_a(a):
        return jnp.zeros((Cp, 1), jnp.float32).at[:C, :].set(a)

    def pad_gru_w(w):
        out = jnp.zeros((Cp, 3 * Cp), jnp.float32)
        for g in range(3):
            out = out.at[:C, g * Cp:g * Cp + C].set(w[:, g * C:(g + 1) * C])
        return out

    def pad_gru_b(b):
        out = jnp.zeros((1, 3 * Cp), jnp.float32)
        for g in range(3):
            out = out.at[:, g * Cp:g * Cp + C].set(b[:, g * C:(g + 1) * C])
        return out

    return {
        "W_a": wa, "a_src_a": asrc, "a_dst_a": adst,
        "W_b": pad_w(raw["W_b"]), "a_src_b": pad_a(raw["a_src_b"]),
        "a_dst_b": pad_a(raw["a_dst_b"]),
        "W_c": pad_w(raw["W_c"]), "a_src_c": pad_a(raw["a_src_c"]),
        "a_dst_c": pad_a(raw["a_dst_c"]),
        "W_ih": pad_gru_w(raw["W_ih"]).astype(jnp.bfloat16),
        "W_hh": pad_gru_w(raw["W_hh"]).astype(jnp.bfloat16),
        "b_ih": pad_gru_b(raw["b_ih"]), "b_hh": pad_gru_b(raw["b_hh"]),
    }


def ggat_forward(x, adj, params, *, n_heads, n_class, alpha,
                 tile_n=None, tile_k=None):
    N, _ = x.shape
    c_pad = _pad_to_lane(n_class)
    tile_n, tile_k = _pick_tiles(N, tile_n, tile_k)
    assert N % tile_n == 0 and tile_n % 8 == 0, \
        "row tile must divide N and be a multiple of 8"
    assert N % tile_k == 0 and (tile_k % 128 == 0 or tile_k == N), \
        "column block must divide N and be a multiple of 128 (or N itself)"

    p = prepare_params(params, n_class=n_class, n_heads=n_heads, c_pad=c_pad)

    # Adjacency stream: int8 0/1 (expanded to the additive -inf bias in-kernel)
    # when the row tile keeps int8 sublane tiling happy; bf16 bias otherwise.
    if tile_n % 32 == 0:
        adj_enc = (adj > 0).astype(jnp.int8)
    else:
        adj_enc = jnp.where(adj > 0, 0.0, NEG_INF).astype(jnp.bfloat16)
    # TODO(synk): block-sparse skipping of fully-masked column blocks via
    # PrefetchScalarGridSpec for very sparse graphs.

    vmem_bytes = _vmem_limit_bytes(tile_n, tile_k, n_heads, c_pad)

    # ---- layer a: projection + attention scores hoisted out of the grid ----
    wh_a = jnp.dot(x, p["W_a"], preferred_element_type=jnp.float32)   # (N,H*Cp)
    fsrc_a = jnp.dot(wh_a, p["a_src_a"])                              # (N, H)
    fdst_a = jnp.dot(wh_a, p["a_dst_a"]).T                            # (H, N)
    h = _run_layer_a(fsrc_a, fdst_a, wh_a.astype(jnp.bfloat16), adj_enc,
                     n_heads=n_heads, c_pad=c_pad, alpha=alpha,
                     tile_n=tile_n, tile_k=tile_k, vmem_bytes=vmem_bytes,
                     out_dtype=jnp.bfloat16)

    # ---- layers b, c: single-head GAT + shared public GRU cell ----
    for wkey, skey, dkey, out_dtype in (
            ("W_b", "a_src_b", "a_dst_b", jnp.bfloat16),
            ("W_c", "a_src_c", "a_dst_c", jnp.float32)):
        wh = jnp.dot(h.astype(jnp.float32), p[wkey],
                     preferred_element_type=jnp.float32)              # (N, Cp)
        fsrc = jnp.dot(wh, p[skey])                                   # (N, 1)
        fdst = jnp.dot(wh, p[dkey]).T                                 # (1, N)
        h = _run_layer_gru(fsrc, fdst, wh.astype(jnp.bfloat16), adj_enc, h,
                           p["W_ih"], p["W_hh"], p["b_ih"], p["b_hh"],
                           c_pad=c_pad, alpha=alpha, tile_n=tile_n,
                           tile_k=tile_k, vmem_bytes=vmem_bytes,
                           out_dtype=out_dtype)

    return h[:, :n_class]   # drop lane padding


# --------------------------- deterministic params ----------------------------
def init_params(key, n_features, n_class, n_heads):
    ks = jax.random.split(key, 12)

    def xavier(k, shape, fan_in):
        return (jax.random.normal(k, shape, jnp.float32)
                * (1.0 / jnp.sqrt(float(fan_in)))).astype(jnp.float32)

    C = n_class
    return {
        # layer a: n_heads independent heads, n_features -> n_class
        "W_a":      xavier(ks[0], (n_heads, n_features, C), n_features),
        "a_src_a":  xavier(ks[1], (n_heads, C, 1), C),
        "a_dst_a":  xavier(ks[2], (n_heads, C, 1), C),
        # layer b / c: n_class -> n_class, single head
        "W_b":      xavier(ks[3], (C, C), C),
        "a_src_b":  xavier(ks[4], (C, 1), C),
        "a_dst_b":  xavier(ks[5], (C, 1), C),
        "W_c":      xavier(ks[6], (C, C), C),
        "a_src_c":  xavier(ks[7], (C, 1), C),
        "a_dst_c":  xavier(ks[8], (C, 1), C),
        # shared public GRUCell (input C, hidden C), gates packed [r | z | n]
        "W_ih":     xavier(ks[9], (C, 3 * C), C),
        "W_hh":     xavier(ks[10], (C, 3 * C), C),
        "b_ih":     jnp.zeros((1, 3 * C), jnp.float32),
        "b_hh":     jnp.zeros((1, 3 * C), jnp.float32),
    }


if __name__ == "__main__":
    # Small shapes that still exercise the full kernel structure:
    # 4 row tiles (shards across v7x's 2 TCs), 2 column blocks (online-softmax
    # carry across the "arbitrary" axis), int8 adjacency stream.
    N_NODES = 256
    N_FEATURES = 32
    N_HID = 16          # present in __init__, unused by forward()
    N_CLASS = 8
    N_HEADS = 2
    ALPHA = 0.2
    DROPOUT = 0.6       # eval-mode identity
    TILE_N = 64
    TILE_K = 128

    key = jax.random.PRNGKey(0)
    kx, kadj, kp = jax.random.split(key, 3)

    x = jax.random.normal(kx, (N_NODES, N_FEATURES), jnp.float32)
    # random sparse symmetric adjacency with self loops (0/1 floats)
    a = (jax.random.uniform(kadj, (N_NODES, N_NODES)) < 0.05).astype(jnp.float32)
    adj = jnp.clip(a + a.T + jnp.eye(N_NODES, dtype=jnp.float32), 0.0, 1.0)

    params = init_params(kp, N_FEATURES, N_CLASS, N_HEADS)

    out = ggat_forward(x, adj, params, n_heads=N_HEADS, n_class=N_CLASS,
                       alpha=ALPHA, tile_n=TILE_N, tile_k=TILE_K)
    out = jax.block_until_ready(out)
    assert out.shape == (N_NODES, N_CLASS)
    assert bool(jnp.all(jnp.isfinite(out)))
    print("KERNEL_OK")
</pallas_src>

<mosaic_0001>
module attributes {stable_mosaic.version = 11 : i64} {
  func.func @ggat_layer_a_kernel(%arg0: i32, %arg1: i32, %arg2: memref<64x2xf32, #tpu.memory_space<vmem>>, %arg3: memref<2x128xf32, #tpu.memory_space<vmem>>, %arg4: memref<128x256xbf16, #tpu.memory_space<vmem>>, %arg5: memref<64x128xi8, #tpu.memory_space<vmem>>, %arg6: memref<64x128xbf16, #tpu.memory_space<vmem>>, %arg7: memref<2x64x1xf32, #tpu.memory_space<vmem>>, %arg8: memref<2x64x1xf32, #tpu.memory_space<vmem>>, %arg9: memref<2x64x128xf32, #tpu.memory_space<vmem>>) attributes {dimension_semantics = [#tpu.dimension_semantics<parallel>, #tpu.dimension_semantics<arbitrary>], iteration_bounds = array<i64: 4, 2>, scalar_prefetch = 0 : i64, scratch_operands = 3 : i64, tpu.core_type = #tpu.core_type<tc>, window_params = [{transform_indices = @transform_0, window_bounds = array<i64: 64, 2>}, {transform_indices = @transform_1, window_bounds = array<i64: 2, 128>}, {transform_indices = @transform_2, window_bounds = array<i64: 128, 256>}, {transform_indices = @transform_3, window_bounds = array<i64: 64, 128>}, {transform_indices = @transform_4, window_bounds = array<i64: 64, 128>}]} {
    %c0_i32 = arith.constant 0 : i32
    %0 = arith.cmpi eq, %arg1, %c0_i32 : i32
    %1 = arith.extui %0 : i1 to i32
    %c0_i32_0 = arith.constant 0 : i32
    %2 = arith.cmpi ne, %1, %c0_i32_0 : i32
    scf.if %2 {
      %cst_53 = arith.constant 0xFF800000 : f32
      %99 = vector.broadcast %cst_53 : f32 to vector<2x64x1xf32>
      %c0_54 = arith.constant 0 : index
      %c0_55 = arith.constant 0 : index
      %c0_56 = arith.constant 0 : index
      %100 = vector.load %arg7[%c0_54, %c0_55, %c0_56] : memref<2x64x1xf32, #tpu.memory_space<vmem>>, vector<2x64x1xf32>
      tpu.vector_store %arg7[%c0_54, %c0_55, %c0_56], %99 {strides = array<i32>} : memref<2x64x1xf32, #tpu.memory_space<vmem>>, vector<2x64x1xf32>,
      %cst_57 = arith.constant 0.000000e+00 : f32
      %101 = vector.broadcast %cst_57 : f32 to vector<2x64x1xf32>
      %c0_58 = arith.constant 0 : index
      %c0_59 = arith.constant 0 : index
      %c0_60 = arith.constant 0 : index
      %102 = vector.load %arg8[%c0_58, %c0_59, %c0_60] : memref<2x64x1xf32, #tpu.memory_space<vmem>>, vector<2x64x1xf32>
      tpu.vector_store %arg8[%c0_58, %c0_59, %c0_60], %101 {strides = array<i32>} : memref<2x64x1xf32, #tpu.memory_space<vmem>>, vector<2x64x1xf32>,
      %cst_61 = arith.constant 0.000000e+00 : f32
      %103 = vector.broadcast %cst_61 : f32 to vector<2x64x128xf32>
      %c0_62 = arith.constant 0 : index
      %c0_63 = arith.constant 0 : index
      %c0_64 = arith.constant 0 : index
      %104 = vector.load %arg9[%c0_62, %c0_63, %c0_64] : memref<2x64x128xf32, #tpu.memory_space<vmem>>, vector<2x64x128xf32>
      tpu.vector_store %arg9[%c0_62, %c0_63, %c0_64], %103 {strides = array<i32>} : memref<2x64x128xf32, #tpu.memory_space<vmem>>, vector<2x64x128xf32>,
    } else {
    }
    %c0 = arith.constant 0 : index
    %c0_1 = arith.constant 0 : index
    %3 = vector.load %arg5[%c0, %c0_1] : memref<64x128xi8, #tpu.memory_space<vmem>>, vector<64x128xi8>
    %4 = arith.sitofp %3 : vector<64x128xi8> to vector<64x128xf32>
    %cst = arith.constant 1.000000e+00 : f32
    %5 = vector.broadcast %cst : f32 to vector<64x128xf32>
    %6 = arith.subf %4, %5 : vector<64x128xf32>
    %cst_2 = arith.constant 9.000000e+15 : f32
    %7 = vector.broadcast %cst_2 : f32 to vector<64x128xf32>
    %8 = arith.mulf %6, %7 : vector<64x128xf32>
    %c0_3 = arith.constant 0 : index
    %c0_4 = arith.constant 0 : index
    %9 = vector.load %arg2[%c0_3, %c0_4] : memref<64x2xf32, #tpu.memory_space<vmem>>, vector<64x2xf32>
    %c0_5 = arith.constant 0 : index
    %c0_6 = arith.constant 0 : index
    %10 = vector.load %arg3[%c0_5, %c0_6] : memref<2x128xf32, #tpu.memory_space<vmem>>, vector<2x128xf32>
    %c0_7 = arith.constant 0 : index
    %c0_8 = arith.constant 0 : index
    %11 = vector.load %arg4[%c0_7, %c0_8] : memref<128x256xbf16, #tpu.memory_space<vmem>>, vector<128x256xbf16>
    %12 = vector.extract_strided_slice %9 {offsets = [0, 0], sizes = [64, 1], strides = [1, 1]} : vector<64x2xf32> to vector<64x1xf32>
    %13 = vector.extract_strided_slice %10 {offsets = [0, 0], sizes = [1, 128], strides = [1, 1]} : vector<2x128xf32> to vector<1x128xf32>
    %14 = vector.broadcast %12 : vector<64x1xf32> to vector<64x128xf32>
    %15 = vector.broadcast %13 : vector<1x128xf32> to vector<64x128xf32>
    %16 = arith.addf %14, %15 : vector<64x128xf32>
    %cst_9 = arith.constant 2.000000e-01 : f32
    %17 = vector.broadcast %cst_9 : f32 to vector<64x128xf32>
    %18 = arith.mulf %17, %16 : vector<64x128xf32>
    %19 = arith.maximumf %16, %18 : vector<64x128xf32>
    %20 = arith.addf %19, %8 : vector<64x128xf32>
    %c0_10 = arith.constant 0 : index
    %c0_11 = arith.constant 0 : index
    %c0_12 = arith.constant 0 : index
    %21 = vector.load %arg7[%c0_10, %c0_11, %c0_12] : memref<2x64x1xf32, #tpu.memory_space<vmem>>, vector<1x64x1xf32>
    %22 = vector.shape_cast %21 : vector<1x64x1xf32> to vector<64x1xf32>
    %cst_13 = arith.constant dense<0xFF800000> : vector<64xf32>
    %23 = vector.multi_reduction <maximumf>, %20, %cst_13 [1] : vector<64x128xf32> to vector<64xf32>
    %24 = vector.shape_cast %23 : vector<64xf32> to vector<64x1xf32>
    %25 = arith.maximumf %22, %24 : vector<64x1xf32>
    %26 = arith.subf %22, %25 : vector<64x1xf32>
    %27 = math.exp %26 : vector<64x1xf32>
    %28 = vector.broadcast %25 : vector<64x1xf32> to vector<64x128xf32>
    %29 = arith.subf %20, %28 : vector<64x128xf32>
    %30 = math.exp %29 : vector<64x128xf32>
    %c0_14 = arith.constant 0 : index
    %c0_15 = arith.constant 0 : index
    %c0_16 = arith.constant 0 : index
    %31 = vector.load %arg8[%c0_14, %c0_15, %c0_16] : memref<2x64x1xf32, #tpu.memory_space<vmem>>, vector<1x64x1xf32>
    %32 = vector.shape_cast %31 : vector<1x64x1xf32> to vector<64x1xf32>
    %33 = arith.mulf %27, %32 : vector<64x1xf32>
    %cst_17 = arith.constant dense<0.000000e+00> : vector<64xf32>
    %34 = vector.multi_reduction <add>, %30, %cst_17 [1] : vector<64x128xf32> to vector<64xf32>
    %35 = vector.shape_cast %34 : vector<64xf32> to vector<64x1xf32>
    %36 = arith.addf %33, %35 : vector<64x1xf32>
    %c0_18 = arith.constant 0 : index
    %c0_19 = arith.constant 0 : index
    %c0_20 = arith.constant 0 : index
    %37 = vector.load %arg8[%c0_18, %c0_19, %c0_20] : memref<2x64x1xf32, #tpu.memory_space<vmem>>, vector<1x64x1xf32>
    %38 = vector.shape_cast %37 : vector<1x64x1xf32> to vector<64x1xf32>
    %39 = vector.shape_cast %36 : vector<64x1xf32> to vector<1x64x1xf32>
    tpu.vector_store %arg8[%c0_18, %c0_19, %c0_20], %39 {strides = array<i32>} : memref<2x64x1xf32, #tpu.memory_space<vmem>>, vector<1x64x1xf32>,
    %c0_21 = arith.constant 0 : index
    %c0_22 = arith.constant 0 : index
    %c0_23 = arith.constant 0 : index
    %40 = vector.load %arg9[%c0_21, %c0_22, %c0_23] : memref<2x64x128xf32, #tpu.memory_space<vmem>>, vector<1x64x128xf32>
    %41 = vector.shape_cast %40 : vector<1x64x128xf32> to vector<64x128xf32>
    %42 = vector.broadcast %27 : vector<64x1xf32> to vector<64x128xf32>
    %43 = arith.mulf %42, %41 : vector<64x128xf32>
    %44 = arith.truncf %30 : vector<64x128xf32> to vector<64x128xbf16>
    %45 = vector.extract_strided_slice %11 {offsets = [0, 0], sizes = [128, 128], strides = [1, 1]} : vector<128x256xbf16> to vector<128x128xbf16>
    %cst_24 = arith.constant dense<0.000000e+00> : vector<64x128xf32>
    %46 = tpu.matmul %44, %45, %cst_24 {dimension_numbers = #tpu.dot_dimension_numbers<[1], [0], [0], [1], [0, 0, 1, 1], [], []>} : vector<64x128xbf16>, vector<128x128xbf16>, vector<64x128xf32> -> vector<64x128xf32>
    %47 = arith.addf %43, %46 : vector<64x128xf32>
    %c0_25 = arith.constant 0 : index
    %c0_26 = arith.constant 0 : index
    %c0_27 = arith.constant 0 : index
    %48 = vector.load %arg9[%c0_25, %c0_26, %c0_27] : memref<2x64x128xf32, #tpu.memory_space<vmem>>, vector<1x64x128xf32>
    %49 = vector.shape_cast %48 : vector<1x64x128xf32> to vector<64x128xf32>
    %50 = vector.shape_cast %47 : vector<64x128xf32> to vector<1x64x128xf32>
    tpu.vector_store %arg9[%c0_25, %c0_26, %c0_27], %50 {strides = array<i32>} : memref<2x64x128xf32, #tpu.memory_space<vmem>>, vector<1x64x128xf32>,
    %c0_28 = arith.constant 0 : index
    %c0_29 = arith.constant 0 : index
    %c0_30 = arith.constant 0 : index
    %51 = vector.load %arg7[%c0_28, %c0_29, %c0_30] : memref<2x64x1xf32, #tpu.memory_space<vmem>>, vector<1x64x1xf32>
    %52 = vector.shape_cast %51 : vector<1x64x1xf32> to vector<64x1xf32>
    %53 = vector.shape_cast %25 : vector<64x1xf32> to vector<1x64x1xf32>
    tpu.vector_store %arg7[%c0_28, %c0_29, %c0_30], %53 {strides = array<i32>} : memref<2x64x1xf32, #tpu.memory_space<vmem>>, vector<1x64x1xf32>,
    %54 = vector.extract_strided_slice %9 {offsets = [0, 1], sizes = [64, 1], strides = [1, 1]} : vector<64x2xf32> to vector<64x1xf32>
    %55 = vector.extract_strided_slice %10 {offsets = [1, 0], sizes = [1, 128], strides = [1, 1]} : vector<2x128xf32> to vector<1x128xf32>
    %56 = vector.broadcast %54 : vector<64x1xf32> to vector<64x128xf32>
    %57 = vector.broadcast %55 : vector<1x128xf32> to vector<64x128xf32>
    %58 = arith.addf %56, %57 : vector<64x128xf32>
    %cst_31 = arith.constant 2.000000e-01 : f32
    %59 = vector.broadcast %cst_31 : f32 to vector<64x128xf32>
    %60 = arith.mulf %59, %58 : vector<64x128xf32>
    %61 = arith.maximumf %58, %60 : vector<64x128xf32>
    %62 = arith.addf %61, %8 : vector<64x128xf32>
    %c1 = arith.constant 1 : index
    %c0_32 = arith.constant 0 : index
    %c0_33 = arith.constant 0 : index
    %63 = vector.load %arg7[%c1, %c0_32, %c0_33] : memref<2x64x1xf32, #tpu.memory_space<vmem>>, vector<1x64x1xf32>
    %64 = vector.shape_cast %63 : vector<1x64x1xf32> to vector<64x1xf32>
    %cst_34 = arith.constant dense<0xFF800000> : vector<64xf32>
    %65 = vector.multi_reduction <maximumf>, %62, %cst_34 [1] : vector<64x128xf32> to vector<64xf32>
    %66 = vector.shape_cast %65 : vector<64xf32> to vector<64x1xf32>
    %67 = arith.maximumf %64, %66 : vector<64x1xf32>
    %68 = arith.subf %64, %67 : vector<64x1xf32>
    %69 = math.exp %68 : vector<64x1xf32>
    %70 = vector.broadcast %67 : vector<64x1xf32> to vector<64x128xf32>
    %71 = arith.subf %62, %70 : vector<64x128xf32>
    %72 = math.exp %71 : vector<64x128xf32>
    %c1_35 = arith.constant 1 : index
    %c0_36 = arith.constant 0 : index
    %c0_37 = arith.constant 0 : index
    %73 = vector.load %arg8[%c1_35, %c0_36, %c0_37] : memref<2x64x1xf32, #tpu.memory_space<vmem>>, vector<1x64x1xf32>
    %74 = vector.shape_cast %73 : vector<1x64x1xf32> to vector<64x1xf32>
    %75 = arith.mulf %69, %74 : vector<64x1xf32>
    %cst_38 = arith.constant dense<0.000000e+00> : vector<64xf32>
    %76 = vector.multi_reduction <add>, %72, %cst_38 [1] : vector<64x128xf32> to vector<64xf32>
    %77 = vector.shape_cast %76 : vector<64xf32> to vector<64x1xf32>
    %78 = arith.addf %75, %77 : vector<64x1xf32>
    %c1_39 = arith.constant 1 : index
    %c0_40 = arith.constant 0 : index
    %c0_41 = arith.constant 0 : index
    %79 = vector.load %arg8[%c1_39, %c0_40, %c0_41] : memref<2x64x1xf32, #tpu.memory_space<vmem>>, vector<1x64x1xf32>
    %80 = vector.shape_cast %79 : vector<1x64x1xf32> to vector<64x1xf32>
    %81 = vector.shape_cast %78 : vector<64x1xf32> to vector<1x64x1xf32>
    tpu.vector_store %arg8[%c1_39, %c0_40, %c0_41], %81 {strides = array<i32>} : memref<2x64x1xf32, #tpu.memory_space<vmem>>, vector<1x64x1xf32>,
    %c1_42 = arith.constant 1 : index
    %c0_43 = arith.constant 0 : index
    %c0_44 = arith.constant 0 : index
    %82 = vector.load %arg9[%c1_42, %c0_43, %c0_44] : memref<2x64x128xf32, #tpu.memory_space<vmem>>, vector<1x64x128xf32>
    %83 = vector.shape_cast %82 : vector<1x64x128xf32> to vector<64x128xf32>
    %84 = vector.broadcast %69 : vector<64x1xf32> to vector<64x128xf32>
    %85 = arith.mulf %84, %83 : vector<64x128xf32>
    %86 = arith.truncf %72 : vector<64x128xf32> to vector<64x128xbf16>
    %87 = vector.extract_strided_slice %11 {offsets = [0, 128], sizes = [128, 128], strides = [1, 1]} : vector<128x256xbf16> to vector<128x128xbf16>
    %cst_45 = arith.constant dense<0.000000e+00> : vector<64x128xf32>
    %88 = tpu.matmul %86, %87, %cst_45 {dimension_numbers = #tpu.dot_dimension_numbers<[1], [0], [0], [1], [0, 0, 1, 1], [], []>} : vector<64x128xbf16>, vector<128x128xbf16>, vector<64x128xf32> -> vector<64x128xf32>
    %89 = arith.addf %85, %88 : vector<64x128xf32>
    %c1_46 = arith.constant 1 : index
    %c0_47 = arith.constant 0 : index
    %c0_48 = arith.constant 0 : index
    %90 = vector.load %arg9[%c1_46, %c0_47, %c0_48] : memref<2x64x128xf32, #tpu.memory_space<vmem>>, vector<1x64x128xf32>
    %91 = vector.shape_cast %90 : vector<1x64x128xf32> to vector<64x128xf32>
    %92 = vector.shape_cast %89 : vector<64x128xf32> to vector<1x64x128xf32>
    tpu.vector_store %arg9[%c1_46, %c0_47, %c0_48], %92 {strides = array<i32>} : memref<2x64x128xf32, #tpu.memory_space<vmem>>, vector<1x64x128xf32>,
    %c1_49 = arith.constant 1 : index
    %c0_50 = arith.constant 0 : index
    %c0_51 = arith.constant 0 : index
    %93 = vector.load %arg7[%c1_49, %c0_50, %c0_51] : memref<2x64x1xf32, #tpu.memory_space<vmem>>, vector<1x64x1xf32>
    %94 = vector.shape_cast %93 : vector<1x64x1xf32> to vector<64x1xf32>
    %95 = vector.shape_cast %67 : vector<64x1xf32> to vector<1x64x1xf32>
    tpu.vector_store %arg7[%c1_49, %c0_50, %c0_51], %95 {strides = array<i32>} : memref<2x64x1xf32, #tpu.memory_space<vmem>>, vector<1x64x1xf32>,
    %c1_i32 = arith.constant 1 : i32
    %96 = arith.cmpi eq, %arg1, %c1_i32 : i32
    %97 = arith.extui %96 : i1 to i32
    %c0_i32_52 = arith.constant 0 : i32
    %98 = arith.cmpi ne, %97, %c0_i32_52 : i32
    scf.if %98 {
      %cst_53 = arith.constant 0.000000e+00 : f32
      %99 = vector.broadcast %cst_53 : f32 to vector<64x128xf32>
      %c0_54 = arith.constant 0 : index
      %c0_55 = arith.constant 0 : index
      %c0_56 = arith.constant 0 : index
      %100 = vector.load %arg8[%c0_54, %c0_55, %c0_56] : memref<2x64x1xf32, #tpu.memory_space<vmem>>, vector<1x64x1xf32>
      %101 = vector.shape_cast %100 : vector<1x64x1xf32> to vector<64x1xf32>
      %cst_57 = arith.constant 9.99999968E-21 : f32
      %102 = vector.broadcast %cst_57 : f32 to vector<64x1xf32>
      %103 = arith.maximumf %101, %102 : vector<64x1xf32>
      %104 = tpu.reciprocal %103 {approx = true} : vector<64x1xf32> -> vector<64x1xf32>
      %c0_58 = arith.constant 0 : index
      %c0_59 = arith.constant 0 : index
      %c0_60 = arith.constant 0 : index
      %105 = vector.load %arg9[%c0_58, %c0_59, %c0_60] : memref<2x64x128xf32, #tpu.memory_space<vmem>>, vector<1x64x128xf32>
      %106 = vector.shape_cast %105 : vector<1x64x128xf32> to vector<64x128xf32>
      %107 = vector.broadcast %104 : vector<64x1xf32> to vector<64x128xf32>
      %108 = arith.mulf %106, %107 : vector<64x128xf32>
      %cst_61 = arith.constant 0.000000e+00 : f32
      %109 = vector.broadcast %cst_61 : f32 to vector<64x128xf32>
      %110 = arith.cmpf ogt, %108, %109 : vector<64x128xf32>
      %cst_62 = arith.constant 0.000000e+00 : f32
      %111 = vector.broadcast %cst_62 : f32 to vector<64x128xf32>
      %112 = arith.minimumf %108, %111 : vector<64x128xf32>
      %113 = math.exp %112 : vector<64x128xf32>
      %cst_63 = arith.constant 1.000000e+00 : f32
      %114 = vector.broadcast %cst_63 : f32 to vector<64x128xf32>
      %115 = arith.subf %113, %114 : vector<64x128xf32>
      %116 = arith.select %110, %108, %115 : vector<64x128xi1>, vector<64x128xf32>
      %117 = arith.addf %99, %116 : vector<64x128xf32>
      %c1_64 = arith.constant 1 : index
      %c0_65 = arith.constant 0 : index
      %c0_66 = arith.constant 0 : index
      %118 = vector.load %arg8[%c1_64, %c0_65, %c0_66] : memref<2x64x1xf32, #tpu.memory_space<vmem>>, vector<1x64x1xf32>
      %119 = vector.shape_cast %118 : vector<1x64x1xf32> to vector<64x1xf32>
      %cst_67 = arith.constant 9.99999968E-21 : f32
      %120 = vector.broadcast %cst_67 : f32 to vector<64x1xf32>
      %121 = arith.maximumf %119, %120 : vector<64x1xf32>
      %122 = tpu.reciprocal %121 {approx = true} : vector<64x1xf32> -> vector<64x1xf32>
      %c1_68 = arith.constant 1 : index
      %c0_69 = arith.constant 0 : index
      %c0_70 = arith.constant 0 : index
      %123 = vector.load %arg9[%c1_68, %c0_69, %c0_70] : memref<2x64x128xf32, #tpu.memory_space<vmem>>, vector<1x64x128xf32>
      %124 = vector.shape_cast %123 : vector<1x64x128xf32> to vector<64x128xf32>
      %125 = vector.broadcast %122 : vector<64x1xf32> to vector<64x128xf32>
      %126 = arith.mulf %124, %125 : vector<64x128xf32>
      %cst_71 = arith.constant 0.000000e+00 : f32
      %127 = vector.broadcast %cst_71 : f32 to vector<64x128xf32>
      %128 = arith.cmpf ogt, %126, %127 : vector<64x128xf32>
      %cst_72 = arith.constant 0.000000e+00 : f32
      %129 = vector.broadcast %cst_72 : f32 to vector<64x128xf32>
      %130 = arith.minimumf %126, %129 : vector<64x128xf32>
      %131 = math.exp %130 : vector<64x128xf32>
      %cst_73 = arith.constant 1.000000e+00 : f32
      %132 = vector.broadcast %cst_73 : f32 to vector<64x128xf32>
      %133 = arith.subf %131, %132 : vector<64x128xf32>
      %134 = arith.select %128, %126, %133 : vector<64x128xi1>, vector<64x128xf32>
      %135 = arith.addf %117, %134 : vector<64x128xf32>
      %cst_74 = arith.constant 5.000000e-01 : f32
      %136 = vector.broadcast %cst_74 : f32 to vector<64x128xf32>
      %137 = arith.mulf %135, %136 : vector<64x128xf32>
      %138 = arith.truncf %137 : vector<64x128xf32> to vector<64x128xbf16>
      %c0_75 = arith.constant 0 : index
      %c0_76 = arith.constant 0 : index
      %139 = vector.load %arg6[%c0_75, %c0_76] : memref<64x128xbf16, #tpu.memory_space<vmem>>, vector<64x128xbf16>
      tpu.vector_store %arg6[%c0_75, %c0_76], %138 {strides = array<i32>} : memref<64x128xbf16, #tpu.memory_space<vmem>>, vector<64x128xbf16>,
    } else {
    }
    return
  }
  func.func @transform_0(%arg0: i32, %arg1: i32) -> (i32, i32) {
    %c0_i32 = arith.constant 0 : i32
    %c0_i32_0 = arith.constant 0 : i32
    return %arg0, %c0_i32 : i32, i32
  }
  func.func @transform_1(%arg0: i32, %arg1: i32) -> (i32, i32) {
    %c0_i32 = arith.constant 0 : i32
    %c0_i32_0 = arith.constant 0 : i32
    return %c0_i32, %arg1 : i32, i32
  }
  func.func @transform_2(%arg0: i32, %arg1: i32) -> (i32, i32) {
    %c0_i32 = arith.constant 0 : i32
    %c0_i32_0 = arith.constant 0 : i32
    return %arg1, %c0_i32 : i32, i32
  }
  func.func @transform_3(%arg0: i32, %arg1: i32) -> (i32, i32) {
    %c0_i32 = arith.constant 0 : i32
    return %arg0, %arg1 : i32, i32
  }
  func.func @transform_4(%arg0: i32, %arg1: i32) -> (i32, i32) {
    %c0_i32 = arith.constant 0 : i32
    %c0_i32_0 = arith.constant 0 : i32
    return %arg0, %c0_i32 : i32, i32
  }
}

</mosaic_0001>

<bundles_post_ra>
// kernel: tpu_custom_call.1
= control target key start
LH: loop header
LB: loop body
LE: loop exit
PB: predicated region body
PF: predicated region fallthrough
CT: control target
= control target key end

     0   :  { %s3155_s0 = inlined_call_operand.vmem [shape: f32[256,2], index: 0, kind: input, shape index: {}]   ;;  %s3156_s1 = inlined_call_operand.vmem [shape: f32[2,256], index: 1, kind: input, shape index: {}]   ;;  %s3157_s2 = inlined_call_operand.vmem [shape: bf16[256,256], index: 2, kind: input, shape index: {}]   ;;  %s3158_s3 = inlined_call_operand.hbm [shape: s8[256,256], index: 3, kind: input, shape index: {}]   ;;  %s3159_s4 = inlined_call_operand.hbm [shape: bf16[256,128], index: 4, kind: output, shape index: {}]  }
   0x1   :  { %3166 = sst [smem:[#allocation17_spill]] %s3158_s3 }
   0x2   :  { %9 = vsyncpa [#allocation6], 0 }
   0x3   :  { %11 = vsyncpa [#allocation6 + $0x1], 0 }
   0x4   :  { %12 = vsyncpa [#allocation7], 0 }
   0x5   :  { %14 = vsyncpa [#allocation7 + $0x1], 0  ;;  %s2380_s15 = smov 0   ;;  %s2382_s16 = smov 0  }
   0x6   :  { %s2384_s17 = smov 0   ;;  %s2386_s18 = smov 0  }
   0x7   :  { %s2388_s19 = smov 0   ;;  %s2390_s20 = smov 0  }
   0x8   :  { %s2392_s21 = smov 0   ;;  %s2394_s22 = smov 0  }
   0x9   :  { %s2396_s23 = smov 0   ;;  %s2398_s24 = smov 0  }
   0xa   :  { %s2400_s25 = smov 0  }
   0xb LB: > { %3167 = sst [smem:[#allocation11_spill]] %s2333_s23  ;;  %s1733_s26 = sadd.s32 4294967295, %s2341_s25   ;;  %s2341_s25 = sphi %s2400_s25, %s20_s25   ;;  %s2337_s24 = sphi %s2398_s24, %s3189_s24   ;;  %s2333_s23 = sphi %s2396_s23, %s3188_s23   ;;  %s2329_s22 = sphi %s2394_s22, %s3187_s22   ;;  %s2325_s21 = sphi %s2392_s21, %s3186_s21   ;;  %s2321_s20 = sphi %s2390_s20, %s3195_s20   ;;  %s2317_s19 = sphi %s2388_s19, %s3194_s19   ;;  %s2313_s18 = sphi %s2386_s18, %s3193_s18   ;;  %s2309_s17 = sphi %s2384_s17, %s3192_s17   ;;  %s2305_s16 = sphi %s2382_s16, %s3191_s16   ;;  %s2301_s15 = sphi %s2380_s15, %s3190_s15  }
   0xc   : > { %3168 = sst [smem:[#allocation12_spill]] %s2337_s24  ;;  %s1734_s27 = sadd.s32 4294967294, %s2341_s25  }
   0xd   : > { %s29_s28 = sadd.s32 1, %s2333_s23  ;;  %s32_s29 = sadd.s32 1, %s2337_s24 }
   0xe   : > { %p30_p0 = scmp.ge.s32.totalorder %s29_s28, 2  ;;  %s119_s30 = sadd.s32 1, %s2321_s20 }
   0xf   : > { %p126_p1 = scmp.ne.s32.totalorder %s2321_s20, %s2317_s19  ;;  %p127_p2 = scmp.eq.s32.totalorder %s2341_s25, 0 }
  0x10   : > { %s3197_s28 = smov (%p30_p0, %s29_s28), 0  ;;  %s3199_s29 = smov (!%p30_p0, %s32_s29), %s2337_s24 }
  0x11   : > { %3169 = sst [smem:[#allocation13_spill]] %s3197_s28  ;;  %s115_s5 = ssub.s32 %s2333_s23, %s3197_s28 }
  0x12   : > { %p2446_p3 = por %p127_p2, %p126_p1  ;;  %p34_p4 = scmp.ge.s32.totalorder %s3199_s29, 4 }
  0x13   : > { %p132_p5 = scmp.ne.s32.totalorder %s2317_s19, %s2313_s18  ;;  %p133_p6 = scmp.eq.s32.totalorder %s1733_s26, 0 }
  0x14   : > { %s145_s7 = sadd.s32 1, %s2309_s17  ;;  %s3201_s29 = smov (%p34_p4, %s3199_s29), 0 }
  0x15   : > { %3171 = sst [smem:[#allocation14_spill]] %s3201_s29  ;;  %p2454_p7 = por %p133_p6, %p132_p5 }
  0x16   : > { %p155_p8 = scmp.ne.s32.totalorder %s2309_s17, %s2305_s16  ;;  %s114_s9 = ssub.s32 %s2337_s24, %s3201_s29 }
  0x17   : > { %p156_p9 = scmp.eq.s32.totalorder %s1733_s26, 7  ;;  %s116_s10 = sor.u32 %s115_s5, %s114_s9 }
  0x18   : > { %p143_p10 = scmp.eq.s32.totalorder %s114_s9, 0  ;;  %p117_p11 = scmp.eq.s32.totalorder %s116_s10, 0 }
  0x19   : > { %p2462_p12 = por %p156_p9, %p155_p8  ;;  %p161_p13 = scmp.ne.s32.totalorder %s2305_s16, %s2301_s15 }
  0x1a   : > { %s2467_s12 = scalar_select %p143_p10, %s2309_s17, %s145_s7  }
  0x1b   : > { %s3173_s11 = scalar_select %p2462_p12, 1, 0 }
  0x1c   : > { %3174 = sst [smem:[#allocation15_spill]] %s2467_s12  ;;  %p162_p0 = scmp.eq.s32.totalorder %s1734_s27, 7 }
  0x1d   : > { %s2470_s13 = scalar_select %p117_p11, %s2321_s20, %s119_s30  }
  0x1e   : > { %p1923_p1 = scmp.lt.s32.totalorder %s2341_s25, 8  ;;  %p2475_p2 = por %p162_p0, %p161_p13 }
  0x1f   : > { %3175 = sst [smem:[#allocation16_spill]] %s2470_s13  ;;  %s208_s18 = sand.u32 1, %s2321_s20  }
  0x20   : > { %s3176_s14 = scalar_select %p2475_p2, 1, 0 }
  0x21   : > { %s1737_s26 = sshll.u32 %s208_s18, 4  ;;  %s1805_s5 = sshll.u32 %s2337_s24, 2 }
  0x22   : > { %s218_s9 = sadd.s32 %s2333_s23, %s1805_s5  ;;  %s212_s10 = scalar_lea.vmem [#allocation5], %s1737_s26 }
  0x23   : > { %s221_s29 = sshll.u32 %s212_s10, 4  ;;  %s1740_s28 = sshll.u32 %s218_s9, 7  ;;  %s2482_s29 = int_to_ptr.vmem [resolvable:$true] %s221_s29 }
  0x24   : > { %s3177_s3 = sld [smem:[#allocation17_spill]]  ;;  %p2491_p4 = pnand %p1923_p1, %p2446_p3 }
  0x25   : > { %s2495_s26 = scalar_lea.sflag [#allocation6], %s208_s18 }
  0x26   : > { %p2191_p6 = pneg %p2491_p4 }
  0x2a   : > { %s2487_s30 = scalar_lea.hbm %s3177_s3, %s1740_s28  ;;  %s2194_s12 = scalar_lea.hbm %s3177_s3, 2048 }
  0x2b   : > { %s2189_s5 = scalar_lea.hbm %s2487_s30, 256  ;;  %p2195_p3 = scmp.lt.u32.totalorder %s2487_s30, %s3177_s3 }
  0x2c   : > { %p2190_p5 = scmp.ne.s32.totalorder %s2487_s30, %s2189_s5  ;;  %p2196_p10 = scmp.lt.u32.totalorder %s2194_s12, %s2189_s5 }
  0x2d   : > { %p2198_p13 = scmp.lt.u32.totalorder %s2189_s5, %s2487_s30 }
  0x2e   : > { %p2192_p8 = pnand %p2191_p6, %p2190_p5  ;;  %p2197_p11 = por %p2196_p10, %p2195_p3 }
  0x30   : > { %p2193_p9 = pneg %p2192_p8  ;;  %p2199_p0 = por %p2198_p13, %p2197_p11 }
  0x32   : > { %p2200_p1 = pnand %p2199_p0, %p2193_p9 }
  0x34   : > { %2203 = shalt.err (!%p2200_p1)
}
  0x35   : > { %s2204_s18 = scalar_lea.vmem %s2482_s29, 256  ;;  %s2343_s7 = smov [#allocation5]  }
  0x36   : > { %p2205_p5 = scmp.ne.s32.totalorder %s2482_s29, %s2204_s18  ;;  %s2209_s28 = sshll.u32 %s2343_s7, 4  ;;  %s2210_s28 = int_to_ptr.vmem [resolvable:$false] %s2209_s28 }
  0x37   : > { %s2211_s6 = scalar_lea.vmem %s2210_s28, 512  ;;  %p2212_p12 = scmp.lt.s32.totalorder %s2482_s29, %s2210_s28 }
  0x38   : > { %p2207_p8 = pnand %p2205_p5, %p2191_p6  ;;  %p2213_p3 = scmp.lt.s32.totalorder %s2211_s6, %s2204_s18 }
  0x3a   : > { %p2208_p2 = pneg %p2207_p8  ;;  %p2214_p10 = por %p2213_p3, %p2212_p12 }
  0x3c   : > { %p2215_p11 = pnand %p2214_p10, %p2208_p2 }
  0x3e   : > { %2218 = shalt.err (!%p2215_p11)
}
  0x3f   : > { %s2344_s5 = smov 256   ;;  %s2345_s12 = smov 128  }
  0x40   : > { %s2346_s9 = smov 8   ;;  %p1741_p6 = scmp.ge.s32.totalorder %s2341_s25, 1 }
  0x41   : > { %1918 = dma.hbm_to_vmem [thread:$0]  (!%p2491_p4), %s2487_s30, 256, %s2482_s29, %s2495_s26, %s2344_s5, %s2345_s12, %s2346_s9  }
  0x42   : > { %p229_p9 = scmp.lt.s32.totalorder %s2341_s25, 9 }
  0x44   : > { %p230_p13 = pnand %p1741_p6, %p229_p9 }
  0x45   : > { %s235_s10 = sand.u32 (!%p230_p13), 1, %s2317_s19  }
  0x46   : > { %233 = sbr.rel (%p230_p13) target bundleno = 1002 (0x3ea), region = 36  ;;  %s2526_s18 = sshll.u32 (!%p230_p13), %s235_s10, 4 }
  0x47   : > { %s236_s7 = scalar_lea.sflag (!%p230_p13), [#allocation6], %s235_s10 }
  0x4d   : > { %2292 = dma.done.wait (%p2454_p7), %s236_s7, 256  }
  0x4e   : > { %2294 = vsyncadd (%p2454_p7), %s236_s7, 4294967040  ;;  %s3163_s29 = sand.u32 1, %s2305_s16   ;;  %s1744_s30 = sshll.u32 %s2329_s22, 3 }
  0x4f   : > { %s1743_s27 = sshll.u32 %s3163_s29, 5  ;;  %p280_p12 = scmp.lt.s32.totalorder %s1744_s30, 31 }
  0x50   : > { %p285_p2 = scmp.lt.s32.totalorder %s2325_s21, 1  ;;  %s1747_s5 = sshll.u32 %s2325_s21, 4 }
  0x51   : > { %s3203_s30 = smov (!%p280_p12, %s1744_s30), 31  ;;  %p290_p7 = scmp.lt.s32.totalorder %s1747_s5, 31 }
  0x52   : > { %s286_s26 = scalar_select %p285_p2, %s2325_s21, 1 }
  0x53   : > { %s1745_s6 = sshll.u32 %s3203_s30, 3  ;;  %s3205_s5 = smov (!%p290_p7, %s1747_s5), 31 }
  0x54   : > { %s2543_s8 = scalar_lea.vmem %s3155_s0, %s1745_s6  ;;  %s1746_s10 = sshll.u32 %s286_s26, 1 }
  0x55   : > { %s2548_s3 = scalar_lea.vmem %s3156_s1, %s1746_s10  ;;  %s1806_s29 = sshll.u32 %s3205_s5, 3 }
  0x56   : > { %s2553_s13 = scalar_lea.vmem %s3157_s2, %s1806_s29  ;;  %s2555_s30 = scalar_lea.vmem [#allocation8], %s1743_s27 }
  0x57   : > { %p1750_p4 = scmp.ne.s32.totalorder %s2325_s21, 0 }
  0x58   : > { %vm303_vm0 = vcmask (!%p1750_p4), 7168   ;;  %v2347_v0 = vmov (!%p1750_p4), -inf   ;;  %v2348_v1 = vmov (!%p1750_p4), 0.0  }
  0x59   : > { %302 = sbr.rel (%p1750_p4) target bundleno = 113 (0x71), region = 44  ;;  %304 = vst.msk [vmem:[#allocation2] sm:$0xff] (!%p1750_p4), %vm303_vm0, %v2347_v0  ;;  %305 = vst.msk [vmem:[#allocation2 + $0x8] sm:$0xff] (!%p1750_p4), %vm303_vm0, %v2347_v0 }
  0x5a   : > { %306 = vst.msk [vmem:[#allocation2 + $0x10] sm:$0xff] (!%p1750_p4), %vm303_vm0, %v2347_v0  ;;  %307 = vst.msk [vmem:[#allocation2 + $0x18] sm:$0xff] (!%p1750_p4), %vm303_vm0, %v2347_v0 }
  0x5b   : > { %308 = vst.msk [vmem:[#allocation2 + $0x20] sm:$0xff] (!%p1750_p4), %vm303_vm0, %v2347_v0  ;;  %309 = vst.msk [vmem:[#allocation2 + $0x28] sm:$0xff] (!%p1750_p4), %vm303_vm0, %v2347_v0 }
  0x5c   : > { %310 = vst.msk [vmem:[#allocation2 + $0x30] sm:$0xff] (!%p1750_p4), %vm303_vm0, %v2347_v0  ;;  %311 = vst.msk [vmem:[#allocation2 + $0x38] sm:$0xff] (!%p1750_p4), %vm303_vm0, %v2347_v0 }
  0x5d   : > { %312 = vst.msk [vmem:[#allocation2 + $0x40] sm:$0xff] (!%p1750_p4), %vm303_vm0, %v2347_v0  ;;  %313 = vst.msk [vmem:[#allocation2 + $0x48] sm:$0xff] (!%p1750_p4), %vm303_vm0, %v2347_v0 }
  0x5e   : > { %314 = vst.msk [vmem:[#allocation2 + $0x50] sm:$0xff] (!%p1750_p4), %vm303_vm0, %v2347_v0  ;;  %315 = vst.msk [vmem:[#allocation2 + $0x58] sm:$0xff] (!%p1750_p4), %vm303_vm0, %v2347_v0 }
  0x5f   : > { %316 = vst.msk [vmem:[#allocation2 + $0x60] sm:$0xff] (!%p1750_p4), %vm303_vm0, %v2347_v0  ;;  %317 = vst.msk [vmem:[#allocation2 + $0x68] sm:$0xff] (!%p1750_p4), %vm303_vm0, %v2347_v0 }
  0x60   : > { %318 = vst.msk [vmem:[#allocation2 + $0x70] sm:$0xff] %vm303_vm0, %v2347_v0  ;;  %319 = vst.msk [vmem:[#allocation2 + $0x78] sm:$0xff] %vm303_vm0, %v2347_v0 }
  0x61   : > { %320 = vst.msk [vmem:[#allocation3] sm:$0xff] %vm303_vm0, %v2348_v1  ;;  %321 = vst.msk [vmem:[#allocation3 + $0x8] sm:$0xff] %vm303_vm0, %v2348_v1 }
  0x62   : > { %322 = vst.msk [vmem:[#allocation3 + $0x10] sm:$0xff] %vm303_vm0, %v2348_v1  ;;  %323 = vst.msk [vmem:[#allocation3 + $0x18] sm:$0xff] %vm303_vm0, %v2348_v1 }
  0x63   : > { %324 = vst.msk [vmem:[#allocation3 + $0x20] sm:$0xff] %vm303_vm0, %v2348_v1  ;;  %325 = vst.msk [vmem:[#allocation3 + $0x28] sm:$0xff] %vm303_vm0, %v2348_v1 }
  0x64   : > { %326 = vst.msk [vmem:[#allocation3 + $0x30] sm:$0xff] %vm303_vm0, %v2348_v1  ;;  %327 = vst.msk [vmem:[#allocation3 + $0x38] sm:$0xff] %vm303_vm0, %v2348_v1 }
  0x65   : > { %328 = vst.msk [vmem:[#allocation3 + $0x40] sm:$0xff] %vm303_vm0, %v2348_v1  ;;  %329 = vst.msk [vmem:[#allocation3 + $0x48] sm:$0xff] %vm303_vm0, %v2348_v1 }
  0x66   : > { %330 = vst.msk [vmem:[#allocation3 + $0x50] sm:$0xff] %vm303_vm0, %v2348_v1  ;;  %331 = vst.msk [vmem:[#allocation3 + $0x58] sm:$0xff] %vm303_vm0, %v2348_v1 }
  0x67   : > { %332 = vst.msk [vmem:[#allocation3 + $0x60] sm:$0xff] %vm303_vm0, %v2348_v1  ;;  %333 = vst.msk [vmem:[#allocation3 + $0x68] sm:$0xff] %vm303_vm0, %v2348_v1 }
  0x68   : > { %334 = vst.msk [vmem:[#allocation3 + $0x70] sm:$0xff] %vm303_vm0, %v2348_v1  ;;  %335 = vst.msk [vmem:[#allocation3 + $0x78] sm:$0xff] %vm303_vm0, %v2348_v1 }
  0x69   : > { %336 = vst [vmem:[#allocation4] sm:$0xff] %v2348_v1  ;;  %337 = vst [vmem:[#allocation4 + $0x8] sm:$0xff] %v2348_v1 }
  0x6a   : > { %338 = vst [vmem:[#allocation4 + $0x10] sm:$0xff] %v2348_v1  ;;  %339 = vst [vmem:[#allocation4 + $0x18] sm:$0xff] %v2348_v1 }
  0x6b   : > { %340 = vst [vmem:[#allocation4 + $0x20] sm:$0xff] %v2348_v1  ;;  %341 = vst [vmem:[#allocation4 + $0x28] sm:$0xff] %v2348_v1 }
  0x6c   : > { %342 = vst [vmem:[#allocation4 + $0x30] sm:$0xff] %v2348_v1  ;;  %343 = vst [vmem:[#allocation4 + $0x38] sm:$0xff] %v2348_v1 }
  0x6d   : > { %344 = vst [vmem:[#allocation4 + $0x40] sm:$0xff] %v2348_v1  ;;  %345 = vst [vmem:[#allocation4 + $0x48] sm:$0xff] %v2348_v1 }
  0x6e   : > { %346 = vst [vmem:[#allocation4 + $0x50] sm:$0xff] %v2348_v1  ;;  %347 = vst [vmem:[#allocation4 + $0x58] sm:$0xff] %v2348_v1 }
  0x6f   : > { %348 = vst [vmem:[#allocation4 + $0x60] sm:$0xff] %v2348_v1  ;;  %349 = vst [vmem:[#allocation4 + $0x68] sm:$0xff] %v2348_v1 }
  0x70   : > { %350 = vst [vmem:[#allocation4 + $0x70] sm:$0xff] %v2348_v1  ;;  %351 = vst [vmem:[#allocation4 + $0x78] sm:$0xff] %v2348_v1 }
  0x71 PF: > { %v388_v2 = vld [vmem:[%s2543_s8 + $0x10] sm:$0xff]  ;;  %v386_v3 = vld [vmem:[%s2543_s8] sm:$0xff]  ;;  %v2349_v4 = vmov 1   ;;  %v387_v5 = vld [vmem:[%s2543_s8 + $0x8] sm:$0xff]  ;;  %v2350_v6 = vmov 0   ;;  %v451_v12 = vlaneseq  ;;  %s3179_s23 = scalar_lea.vmem [#allocation5], %s2526_s18 }
  0x72   : > { %2025 = vset.pattern.permute.xlu0 %v2349_v4  ;;  %2023 = vset.pattern.permute.xlu1 %v2349_v4  ;;  %v389_v7 = vld [vmem:[%s2543_s8 + $0x18] sm:$0xff]  ;;  %v391_v8 = vld [vmem:[%s2543_s8 + $0x28] sm:$0xff]  ;;  %v390_v9 = vld [vmem:[%s2543_s8 + $0x20] sm:$0xff]  ;;  %vm647_vm1 = vcmask 7168   ;;  %p1775_p0 = scmp.ne.s32.totalorder %s2325_s21, 1 }
  0x73   : > { %862 = vperm.xlu0 %2025, %v388_v2   ;;  %854 = vperm.xlu1 %2023, %v386_v3   ;;  %v392_v10 = vld [vmem:[%s2543_s8 + $0x30] sm:$0xff]  ;;  %v393_v11 = vld [vmem:[%s2543_s8 + $0x38] sm:$0xff]  ;;  %v452_v13 = vshrl.u32 %v451_v12, 7  ;;  %v394_v19 = vld [vmem:[%s2548_s3] sm:$0x3]  ;;  %s3180_s3 = smov %s3179_s23 }
  0x74   : > { %v352_v14 = vld [vmem:[%s3179_s23] sm:$0xff]  ;;  %v2610_v38 = vld [vmem:[%s3180_s3 + $0x8] sm:$0xff] }
  0x75   : > { %v354_v15 = vunpack.c.0.s8 %v352_v14  ;;  %v355_v16 = vunpack.c.1.s8 %v352_v14  ;;  %v453_v17 = vsub.s32 0, %v452_v13  ;;  %v887_v18 = vsub.s32 1, %v452_v13 }
  0x76   : > { %v357_v24 = vunpack.c.3.s8 %v352_v14  ;;  %v356_v43 = vunpack.c.2.s8 %v352_v14  ;;  %v359_v48 = vunpack.c.1.s8 %v2610_v38  ;;  %v358_v56 = vunpack.c.0.s8 %v2610_v38 }
  0x77   : > { %2026 = vset.pattern.permute.xlu0 %v2350_v6  ;;  %858 = vperm.xlu1 %2023, %v387_v5   ;;  %v362_v22 = vcvt.s32.f32 %v354_v15  ;;  %v363_v23 = vcvt.s32.f32 %v355_v16  ;;  %v2601_v25 = vrot.slane %v394_v19, %v453_v17  ;;  %v2603_v26 = vrot.slane %v394_v19, %v887_v18 }
  0x78   : > { %413 = vperm.xlu0 %2026, %v386_v3   ;;  %v365_v32 = vcvt.s32.f32 %v357_v24  ;;  %v364_v55 = vcvt.s32.f32 %v356_v43  ;;  %v367_v0 = vcvt.s32.f32 %v359_v48  ;;  %v360_v24 = vunpack.c.2.s8 %v2610_v38 }
  0x79   : > { %v1751_v28 = vadd.f32 -1.0, %v362_v22  ;;  %v1752_v31 = vadd.f32 -1.0, %v363_v23 }
  0x7a   : > { %v1754_v42 = vadd.f32 -1.0, %v365_v32  ;;  %v1756_v13 = vadd.f32 -1.0, %v367_v0 }
  0x7b   : > { %2024 = vset.pattern.permute.xlu1 %v2350_v6  ;;  %v378_v37 = vmul.f32 9e+15, %v1751_v28  ;;  %v379_v41 = vmul.f32 9e+15, %v1752_v31  ;;  %v361_v31 = vunpack.c.3.s8 %v2610_v38 }
  0x7c   : > { %418 = vperm.xlu0 %2026, %v387_v5   ;;  %428 = vperm.xlu1 %2024, %v389_v7   ;;  %v381_v54 = vmul.f32 9e+15, %v1754_v42  ;;  %v383_v23 = vmul.f32 9e+15, %v1756_v13  ;;  %v2684_v13 = vld [vmem:[#allocation2 + $0x48] sm:$0xff] }
  0x7d   : > { %v369_v43 = vcvt.s32.f32 %v361_v31  ;;  %v2713_v31 = vld [vmem:[#allocation2 + $0x58] sm:$0xff] }
  0x80   : > { %423 = vperm.xlu0 %2026, %v388_v2   ;;  %2027 = vset.pattern.permute.xlu1 %v2349_v4 }
  0x81   : > { %866 = vperm.xlu1 %2027, %v389_v7  }
  0x84   : > { %438 = vperm.xlu0 %2026, %v391_v8  }
  0x85   : > { %2028 = vset.pattern.permute.xlu1 %v2350_v6 }
  0x86   : > { %433 = vperm.xlu1 %2028, %v390_v9  }
  0x88   : > { %443 = vperm.xlu0 %2026, %v392_v10  }
  0x8a   : > { %2029 = vset.pattern.permute.xlu1 %v2349_v4 }
  0x8b   : > { %870 = vperm.xlu1 %2029, %v390_v9   ;;  %v366_v9 = vcvt.s32.f32 %v358_v56 }
  0x8c   : > { %2031 = vset.pattern.permute.xlu0 %v2349_v4 }
  0x8d   : > { %878 = vperm.xlu0 %2031, %v392_v10  }
  0x8f   : > { %874 = vperm.xlu1 %2029, %v391_v8   ;;  %v1753_v8 = vadd.f32 -1.0, %v364_v55 }
  0x91   : > { %2033 = vset.pattern.permute.xlu0 %v2350_v6  ;;  %v380_v19 = vmul.f32 9e+15, %v1753_v8 }
  0x93   : > { %2030 = vset.pattern.permute.xlu1 %v2350_v6 }
  0x94   : > { %448 = vperm.xlu1 %2030, %v393_v11  }
  0x98   : > { %2032 = vset.pattern.permute.xlu1 %v2349_v4 }
  0x99   : > { %882 = vperm.xlu1 %2032, %v393_v11  }
  0x9d   : > { %2034 = vset.pattern.permute.xlu1 %v2350_v6 }
  0xf2   : > { %v863_v20 = vpop.permute.xlu0 %862  ;;  %v855_v21 = vpop.permute.xlu1 %854 }
  0xf3   : > { %v889_v35 = vadd.f32 %v2603_v26, %v855_v21  ;;  %v891_v62 = vadd.f32 %v2603_v26, %v863_v20  ;;  %v1755_v21 = vadd.f32 -1.0, %v366_v9 }
  0xf5   : > { %v897_v49 = vmul.f32 0.2, %v889_v35  ;;  %v899_v10 = vmul.f32 0.2, %v891_v62 }
  0xf6   : > { %v859_v27 = vpop.permute.xlu1 %858 }
  0xf7   : > { %v414_v29 = vpop.permute.xlu0 %413  ;;  %v890_v30 = vadd.f32 %v2603_v26, %v859_v27  ;;  %v905_v1 = vmax.f32 %v889_v35, %v897_v49  ;;  %v907_v27 = vmax.f32 %v891_v62, %v899_v10  ;;  %v2677_v10 = vld [vmem:[#allocation2] sm:$0xff] }
  0xf8   : > { %v455_v33 = vadd.f32 %v2601_v25, %v414_v29 }
  0xf9   : > { %v898_v34 = vmul.f32 0.2, %v890_v30  ;;  %v2632_v17 = vadd.f32 %v905_v1, %v378_v37 }
  0xfa   : > { %v463_v36 = vmul.f32 0.2, %v455_v33 }
  0xfb   : > { %v419_v39 = vpop.permute.xlu0 %418  ;;  %v429_v40 = vpop.permute.xlu1 %428  ;;  %v906_v45 = vmax.f32 %v890_v30, %v898_v34  ;;  %v382_v34 = vmul.f32 9e+15, %v1755_v21  ;;  %v2697_v21 = vld [vmem:[#allocation2 + $0x18] sm:$0xff] }
  0xfc   : > { %v471_v44 = vmax.f32 %v455_v33, %v463_v36  ;;  %v456_v46 = vadd.f32 %v2601_v25, %v419_v39  ;;  %v458_v47 = vadd.f32 %v2601_v25, %v429_v40  ;;  %v368_v36 = vcvt.s32.f32 %v360_v24 }
  0xfd   : > { %v2620_v61 = vadd.f32 %v906_v45, %v379_v41 }
  0xfe   : > { %v464_v50 = vmul.f32 0.2, %v456_v46  ;;  %v466_v51 = vmul.f32 0.2, %v458_v47  ;;  %v2615_v52 = vadd.f32 %v471_v44, %v378_v37  ;;  %v1757_v49 = vadd.f32 -1.0, %v368_v36 }
  0xff   : > { %v424_v53 = vpop.permute.xlu0 %423 }
 0x100   : > { %v472_v57 = vmax.f32 %v456_v46, %v464_v50  ;;  %v474_v58 = vmax.f32 %v458_v47, %v466_v51  ;;  %v457_v59 = vadd.f32 %v2601_v25, %v424_v53  ;;  %495 = vmax.xlane.f32.xlu1 %v2615_v52  ;;  %v867_v60 = vpop.permute.xlu1 %866  ;;  %v1758_v50 = vadd.f32 -1.0, %v369_v43  ;;  %v2041_v43 = vld [vmem:[%s2553_s13 + $0x4] ss:$8 sps:$4 sm:$0xff]  }
 0x101   : > { %v892_v63 = vadd.f32 %v2603_v26, %v867_v60  ;;  %v384_v60 = vmul.f32 9e+15, %v1757_v49  ;;  %1887 = vmatprep.subr.bf16.mxu1 %v2041_v43  ;;  %v2042_v49 = vld [vmem:[%s2553_s13 + $0x30] ss:$8 sps:$4 sm:$0xff]  }
 0x102   : > { %v465_v2 = vmul.f32 0.2, %v457_v59  ;;  %v2624_v3 = vadd.f32 %v472_v57, %v379_v41  ;;  %v2629_v7 = vadd.f32 %v474_v58, %v381_v54  ;;  %v2646_v41 = vadd.f32 %v907_v27, %v380_v19  ;;  %1888 = vmatpush3.bf16.msra.mxu1 %v2041_v43 }
 0x103   : > { %v900_v4 = vmul.f32 0.2, %v892_v63  ;;  %v439_v5 = vpop.permute.xlu0 %438  ;;  %v385_v62 = vmul.f32 9e+15, %v1758_v50  ;;  %v2044_v50 = vld [vmem:[%s2553_s13 + $0x14] ss:$8 sps:$4 sm:$0xff]  }
 0x104   : > { %v460_v6 = vadd.f32 %v2601_v25, %v439_v5  ;;  %497 = vmax.xlane.f32.xlu0 %v2624_v3  ;;  %932 = vmax.xlane.f32.xlu1 %v2620_v61  ;;  %v473_v14 = vmax.f32 %v457_v59, %v465_v2 }
 0x105   : > { %v908_v11 = vmax.f32 %v892_v63, %v900_v4  ;;  %v434_v12 = vpop.permute.xlu1 %433  ;;  %1889 = vmatprep.subr.bf16.mxu1 %v2044_v50 }
 0x106   : > { %v468_v15 = vmul.f32 0.2, %v460_v6  ;;  %v459_v16 = vadd.f32 %v2601_v25, %v434_v12  ;;  %v2639_v30 = vadd.f32 %v473_v14, %v380_v19  ;;  %v2682_v12 = vld [vmem:[#allocation2 + $0x8] sm:$0xff]  ;;  %v2695_v19 = vld [vmem:[#allocation2 + $0x40] sm:$0xff]  ;;  %1890 = vmatpush3.bf16.msra.mxu1 %v2044_v50 }
 0x107   : > { %v2636_v20 = vadd.f32 %v908_v11, %v381_v54  ;;  %v444_v22 = vpop.permute.xlu0 %443 }
 0x108   : > { %v467_v18 = vmul.f32 0.2, %v459_v16  ;;  %930 = vmax.xlane.f32.xlu0 %v2632_v17  ;;  %501 = vmax.xlane.f32.xlu1 %v2629_v7  ;;  %v476_v28 = vmax.f32 %v460_v6, %v468_v15  ;;  %v461_v39 = vadd.f32 %v2601_v25, %v444_v22  ;;  %v2035_v22 = vld [vmem:[%s2553_s13] ss:$8 sps:$4 sm:$0xff]  }
 0x109   : > { %1863 = vmatprep.subr.bf16.mxu0 %v2035_v22 }
 0x10a   : > { %v871_v29 = vpop.permute.xlu1 %870  ;;  %v475_v33 = vmax.f32 %v459_v16, %v467_v18  ;;  %v2648_v42 = vadd.f32 %v476_v28, %v383_v23  ;;  %v469_v48 = vmul.f32 0.2, %v461_v39  ;;  %1864 = vmatpush3.bf16.msra.mxu0 %v2035_v22 }
 0x10b   : > { %v893_v32 = vadd.f32 %v2603_v26, %v871_v29  ;;  %v2711_v29 = vld [vmem:[#allocation2 + $0x10] sm:$0xff] }
 0x10c   : > { %499 = vmax.xlane.f32.xlu0 %v2639_v30  ;;  %936 = vmax.xlane.f32.xlu1 %v2636_v20  ;;  %v879_v37 = vpop.permute.xlu0 %878  ;;  %v2653_v45 = vadd.f32 %v475_v33, %v382_v34  ;;  %v477_v58 = vmax.f32 %v461_v39, %v469_v48  ;;  %v2729_v39 = vld [vmem:[#allocation2 + $0x28] sm:$0xff]  ;;  %v2744_v48 = vld [vmem:[#allocation2 + $0x20] sm:$0xff] }
 0x10d   : > { %v901_v35 = vmul.f32 0.2, %v893_v32  ;;  %v895_v46 = vadd.f32 %v2603_v26, %v879_v37  ;;  %v2727_v37 = vld [vmem:[#allocation2 + $0x50] sm:$0xff] }
 0x10e   : > { %v875_v40 = vpop.permute.xlu1 %874  ;;  %v2665_v2 = vadd.f32 %v477_v58, %v384_v60  ;;  %v2761_v58 = vld [vmem:[#allocation2 + $0x60] sm:$0xff] }
 0x10f   : > { %v894_v38 = vadd.f32 %v2603_v26, %v875_v40  ;;  %v909_v44 = vmax.f32 %v893_v32, %v901_v35  ;;  %v903_v56 = vmul.f32 0.2, %v895_v46  ;;  %v2037_v32 = vld [vmem:[%s2553_s13 + $0x10] ss:$8 sps:$4 sm:$0xff]   ;;  %v2039_v40 = vld [vmem:[%s2553_s13 + $0x20] ss:$8 sps:$4 sm:$0xff]  }
 0x110   : > { %934 = vmax.xlane.f32.xlu0 %v2646_v41  ;;  %505 = vmax.xlane.f32.xlu1 %v2648_v42 }
 0x111   : > { %v902_v47 = vmul.f32 0.2, %v894_v38  ;;  %v2658_v55 = vadd.f32 %v909_v44, %v382_v34  ;;  %v911_v1 = vmax.f32 %v895_v46, %v903_v56  ;;  %1865 = vmatprep.subr.bf16.mxu0 %v2037_v32  ;;  %v2759_v56 = vld [vmem:[#allocation2 + $0x68] sm:$0xff] }
 0x112   : > { %1866 = vmatpush3.bf16.msra.mxu0 %v2037_v32 }
 0x113   : > { %v910_v51 = vmax.f32 %v894_v38, %v902_v47  ;;  %v449_v53 = vpop.permute.xlu1 %448  ;;  %v2671_v6 = vadd.f32 %v911_v1, %v384_v60  ;;  %1867 = vmatprep.subr.bf16.mxu0 %v2039_v40  ;;  %v2045_v60 = vld [vmem:[%s2553_s13 + $0x40] ss:$8 sps:$4 sm:$0xff]  }
 0x114   : > { %v462_v54 = vadd.f32 %v2601_v25, %v449_v53  ;;  %503 = vmax.xlane.f32.xlu0 %v2653_v45 }
 0x115   : > { %v2660_v57 = vadd.f32 %v910_v51, %v383_v23 }
 0x116   : > { %v470_v59 = vmul.f32 0.2, %v462_v54  ;;  %1868 = vmatpush3.bf16.msra.mxu0 %v2039_v40 }
 0x117   : > { %940 = vmax.xlane.f32.xlu1 %v2660_v57  ;;  %1869 = vmatprep.subr.bf16.mxu0 %v2042_v49 }
 0x118   : > { %v478_v63 = vmax.f32 %v462_v54, %v470_v59  ;;  %v883_v0 = vpop.permute.xlu1 %882  ;;  %938 = vmax.xlane.f32.xlu0 %v2658_v55 }
 0x119   : > { %v896_v25 = vadd.f32 %v2603_v26, %v883_v0 }
 0x11a   : > { %v2667_v4 = vadd.f32 %v478_v63, %v385_v62  ;;  %1870 = vmatpush3.bf16.msra.mxu0 %v2042_v49 }
 0x11b   : > { %v904_v5 = vmul.f32 0.2, %v896_v25  ;;  %1871 = vmatprep.subr.bf16.mxu0 %v2045_v60 }
 0x11c   : > { %507 = vmax.xlane.f32.xlu0 %v2665_v2  ;;  %509 = vmax.xlane.f32.xlu1 %v2667_v4 }
 0x11d   : > { %v912_v8 = vmax.f32 %v896_v25, %v904_v5 }
 0x11e   : > { %1872 = vmatpush3.bf16.msra.mxu0 %v2045_v60 }
 0x11f   : > { %v2673_v9 = vadd.f32 %v912_v8, %v385_v62  ;;  %v2047_v62 = vld [vmem:[%s2553_s13 + $0x24] ss:$8 sps:$4 sm:$0xff]   ;;  %v2779_v8 = vld [vmem:[#allocation2 + $0x30] sm:$0xff] }
 0x120   : > { %942 = vmax.xlane.f32.xlu0 %v2671_v6  ;;  %1891 = vmatprep.subr.bf16.mxu1 %v2047_v62 }
 0x121   : > { %944 = vmax.xlane.f32.xlu1 %v2673_v9  ;;  %1892 = vmatpush3.bf16.msra.mxu1 %v2047_v62 }
 0x18d   : > { %v496_v26 = vpop.xlane.xlu1 %495 }
 0x18e   : > { %v2680_v11 = vmax.f32 %v2677_v10, %v496_v26  ;;  %v2048_v26 = vld [vmem:[%s2553_s13 + $0x50] ss:$8 sps:$4 sm:$0xff]  }
 0x18f   : > { %1873 = vmatprep.subr.bf16.mxu0 %v2048_v26 }
 0x190   : > { %845 = vst.msk [vmem:[#allocation2] sm:$0xff] %vm647_vm1, %v2680_v11  ;;  %545 = vperm.xlu0 %2033, %v2680_v11   ;;  %v519_v51 = vsub.f32 %v2677_v10, %v2680_v11  ;;  %v494_v10 = vld [vmem:[#allocation2 + $0x38] sm:$0xff]  ;;  %1874 = vmatpush3.bf16.msra.mxu0 %v2048_v26 }
 0x191   : > { %v498_v14 = vpop.xlane.xlu0 %497  ;;  %v933_v15 = vpop.xlane.xlu1 %932  ;;  %v2050_v11 = vld [vmem:[%s2553_s13 + $0x34] ss:$8 sps:$4 sm:$0xff]  }
 0x192   : > { %v2690_v16 = vmax.f32 %v2682_v12, %v498_v14  ;;  %v2693_v18 = vmax.f32 %v2684_v13, %v933_v15  ;;  %v527_v63 = vmul.f32 1.442695, %v519_v51  ;;  %1893 = vmatprep.subr.bf16.mxu1 %v2050_v11  ;;  %v2056_v51 = vld [vmem:[%s2553_s13 + $0x54] ss:$8 sps:$4 sm:$0xff]  }
 0x193   : > { %1894 = vmatpush3.bf16.msra.mxu1 %v2050_v11 }
 0x194   : > { %846 = vst.msk [vmem:[#allocation2 + $0x8] sm:$0xff] %vm647_vm1, %v2690_v16  ;;  %1266 = vst.msk [vmem:[#allocation2 + $0x48] sm:$0xff] %vm647_vm1, %v2693_v18  ;;  %550 = vperm.xlu1 %2034, %v2690_v16   ;;  %2059 = vpow2.f32 %v527_v63  ;;  %v520_v40 = vsub.f32 %v2682_v12, %v2690_v16  ;;  %v2054_v16 = vld [vmem:[%s2553_s13 + $0x70] ss:$8 sps:$4 sm:$0xff]  }
 0x195   : > { %v931_v23 = vpop.xlane.xlu0 %930  ;;  %v502_v24 = vpop.xlane.xlu1 %501 }
 0x196   : > { %v2706_v27 = vmax.f32 %v2695_v19, %v931_v23  ;;  %v2709_v28 = vmax.f32 %v2697_v21, %v502_v24 }
 0x198   : > { %1265 = vst.msk [vmem:[#allocation2 + $0x40] sm:$0xff] %vm647_vm1, %v2706_v27  ;;  %848 = vst.msk [vmem:[#allocation2 + $0x18] sm:$0xff] %vm647_vm1, %v2709_v28  ;;  %980 = vperm.xlu1 %2034, %v2706_v27   ;;  %v522_v25 = vsub.f32 %v2697_v21, %v2709_v28  ;;  %v954_v62 = vsub.f32 %v2695_v19, %v2706_v27 }
 0x199   : > { %v500_v33 = vpop.xlane.xlu0 %499  ;;  %v937_v34 = vpop.xlane.xlu1 %936 }
 0x19a   : > { %v2722_v35 = vmax.f32 %v2711_v29, %v500_v33  ;;  %v2725_v36 = vmax.f32 %v2713_v31, %v937_v34  ;;  %v533_v21 = vmul.f32 1.442695, %v522_v25  ;;  %v2797_v33 = vld [vmem:[#allocation2 + $0x78] sm:$0xff]  ;;  %v2051_v34 = vld [vmem:[%s2553_s13 + $0x60] ss:$8 sps:$4 sm:$0xff]  }
 0x19b   : > { %1875 = vmatprep.subr.bf16.mxu0 %v2051_v34  ;;  %v962_v19 = vmul.f32 1.442695, %v954_v62 }
 0x19c   : > { %847 = vst.msk [vmem:[#allocation2 + $0x10] sm:$0xff] %vm647_vm1, %v2722_v35  ;;  %1268 = vst.msk [vmem:[#allocation2 + $0x58] sm:$0xff] %vm647_vm1, %v2725_v36  ;;  %985 = vperm.xlu1 %2034, %v2693_v18   ;;  %2061 = vpow2.f32 %v533_v21  ;;  %1876 = vmatpush3.bf16.msra.mxu0 %v2051_v34  ;;  %v957_v27 = vsub.f32 %v2713_v31, %v2725_v36 }
 0x19d   : > { %v935_v38 = vpop.xlane.xlu0 %934  ;;  %v506_v44 = vpop.xlane.xlu1 %505  ;;  %1877 = vmatprep.subr.bf16.mxu0 %v2054_v16 }
 0x19e   : > { %v2739_v46 = vmax.f32 %v2727_v37, %v935_v38  ;;  %v2742_v47 = vmax.f32 %v2729_v39, %v506_v44  ;;  %v2825_v63 = vpop.eup %2059 }
 0x1a0   : > { %1267 = vst.msk [vmem:[#allocation2 + $0x50] sm:$0xff] %vm647_vm1, %v2739_v46  ;;  %850 = vst.msk [vmem:[#allocation2 + $0x28] sm:$0xff] %vm647_vm1, %v2742_v47  ;;  %555 = vperm.xlu1 %2034, %v2722_v35   ;;  %570 = vperm.xlu0 %2033, %v2742_v47   ;;  %v524_v22 = vsub.f32 %v2729_v39, %v2742_v47  ;;  %v2053_v39 = vld [vmem:[%s2553_s13 + $0x44] ss:$8 sps:$4 sm:$0xff]  }
 0x1a1   : > { %v504_v53 = vpop.xlane.xlu0 %503  ;;  %1895 = vmatprep.subr.bf16.mxu1 %v2053_v39  ;;  %1878 = vmatpush3.bf16.msra.mxu0 %v2054_v16 }
 0x1a2   : > { %v2757_v54 = vmax.f32 %v2744_v48, %v504_v53  ;;  %v537_v38 = vmul.f32 1.442695, %v524_v22  ;;  %v529_v53 = vmul.f32 1.442695, %v520_v40  ;;  %1896 = vmatpush3.bf16.msra.mxu1 %v2053_v39 }
 0x1a3   : > { %1897 = vmatprep.subr.bf16.mxu1 %v2056_v51 }
 0x1a4   : > { %849 = vst.msk [vmem:[#allocation2 + $0x20] sm:$0xff] %vm647_vm1, %v2757_v54  ;;  %560 = vperm.xlu1 %2034, %v2709_v28   ;;  %v941_v59 = vpop.xlane.xlu1 %940  ;;  %v2791_v28 = vld [vmem:[#allocation2 + $0x70] sm:$0xff]  ;;  %2063 = vpow2.f32 %v537_v38 }
 0x1a5   : > { %v2769_v0 = vmax.f32 %v2759_v56, %v941_v59  ;;  %v939_v1 = vpop.xlane.xlu0 %938  ;;  %v521_v59 = vsub.f32 %v2711_v29, %v2722_v35  ;;  %v2057_v29 = vld [vmem:[%s2553_s13 + $0x64] ss:$8 sps:$4 sm:$0xff]  }
 0x1a6   : > { %v2774_v5 = vmax.f32 %v2761_v58, %v939_v1  ;;  %v523_v1 = vsub.f32 %v2744_v48, %v2757_v54  ;;  %1898 = vmatpush3.bf16.msra.mxu1 %v2056_v51  ;;  %v2834_v25 = vpop.eup %2061  ;;  %v968_v48 = vmul.f32 1.442695, %v957_v27 }
 0x1a7   : > { %1270 = vst.msk [vmem:[#allocation2 + $0x68] sm:$0xff] %vm647_vm1, %v2769_v0  ;;  %1005 = vperm.xlu0 %2033, %v2769_v0   ;;  %v531_v35 = vmul.f32 1.442695, %v521_v59  ;;  %1899 = vmatprep.subr.bf16.mxu1 %v2057_v29 }
 0x1a8   : > { %1269 = vst.msk [vmem:[#allocation2 + $0x60] sm:$0xff] %vm647_vm1, %v2774_v5  ;;  %990 = vperm.xlu1 %2034, %v2739_v46   ;;  %v535_v26 = vmul.f32 1.442695, %v523_v1 }
 0x1a9   : > { %v508_v14 = vpop.xlane.xlu0 %507  ;;  %v510_v15 = vpop.xlane.xlu1 %509 }
 0x1aa   : > { %v2789_v23 = vmax.f32 %v2779_v8, %v508_v14  ;;  %v518_v24 = vmax.f32 %v494_v10, %v510_v15  ;;  %1900 = vmatpush3.bf16.msra.mxu1 %v2057_v29 }
 0x1ac   : > { %851 = vst.msk [vmem:[#allocation2 + $0x30] sm:$0xff] %vm647_vm1, %v2789_v23  ;;  %v526_v32 = vsub.f32 %v494_v10, %v518_v24  ;;  %852 = vst.msk [vmem:[#allocation2 + $0x38] sm:$0xff] %vm647_vm1, %v518_v24  ;;  %995 = vperm.xlu1 %2034, %v2725_v36   ;;  %580 = vperm.xlu0 %2033, %v518_v24   ;;  %v2058_v10 = vld [vmem:[%s2553_s13 + $0x74] ss:$8 sps:$4 sm:$0xff]   ;;  %v525_v11 = vsub.f32 %v2779_v8, %v2789_v23 }
 0x1ad   : > { %v943_v43 = vpop.xlane.xlu0 %942  ;;  %1901 = vmatprep.subr.bf16.mxu1 %v2058_v10  ;;  %v955_v36 = vsub.f32 %v2684_v13, %v2693_v18 }
 0x1ae   : > { %v945_v44 = vpop.xlane.xlu1 %944  ;;  %v2804_v47 = vmax.f32 %v2791_v28, %v943_v43  ;;  %v541_v50 = vmul.f32 1.442695, %v526_v32  ;;  %v2843_v31 = vpop.eup %2063  ;;  %v539_v14 = vmul.f32 1.442695, %v525_v11  ;;  %1902 = vmatpush3.bf16.msra.mxu1 %v2058_v10 }
 0x1af   : > { %v2807_v49 = vmax.f32 %v2797_v33, %v945_v44 }
 0x1b0   : > { %565 = vperm.xlu1 %2034, %v2757_v54   ;;  %v960_v12 = vsub.f32 %v2791_v28, %v2804_v47  ;;  %1271 = vst.msk [vmem:[#allocation2 + $0x70] sm:$0xff] %vm647_vm1, %v2804_v47  ;;  %2065 = vpow2.f32 %v541_v50  ;;  %v959_v54 = vsub.f32 %v2759_v56, %v2769_v0  ;;  %v964_v56 = vmul.f32 1.442695, %v955_v36 }
 0x1b1   : > { %v961_v60 = vsub.f32 %v2797_v33, %v2807_v49  ;;  %1272 = vst.msk [vmem:[#allocation2 + $0x78] sm:$0xff] %vm647_vm1, %v2807_v49  ;;  %1015 = vperm.xlu0 %2033, %v2807_v49   ;;  %2067 = vpow2.f32 %v529_v53  ;;  %v956_v0 = vsub.f32 %v2727_v37, %v2739_v46 }
 0x1b2   : > { %2069 = vpow2.f32 %v531_v35  ;;  %v972_v15 = vmul.f32 1.442695, %v959_v54 }
 0x1b3   : > { %2071 = vpow2.f32 %v962_v19  ;;  %v966_v22 = vmul.f32 1.442695, %v956_v0 }
 0x1b4   : > { %1000 = vperm.xlu1 %2034, %v2774_v5   ;;  %2073 = vpow2.f32 %v535_v26 }
 0x1b5   : > { %666 = vperm.xlu0 %2033, %v2825_v63   ;;  %2075 = vpow2.f32 %v968_v48 }
 0x1b6   : > { %2077 = vpow2.f32 %v539_v14 }
 0x1b7   : > { %2079 = vpow2.f32 %v972_v15 }
 0x1b8   : > { %575 = vperm.xlu1 %2034, %v2789_v23   ;;  %2081 = vpow2.f32 %v964_v56  ;;  %v958_v23 = vsub.f32 %v2761_v58, %v2774_v5 }
 0x1b9   : > { %681 = vperm.xlu0 %2033, %v2834_v25   ;;  %2083 = vpow2.f32 %v966_v22 }
 0x1ba   : > { %v2849_v8 = vpop.eup %2065  ;;  %v970_v46 = vmul.f32 1.442695, %v958_v23 }
 0x1bb   : > { %v2851_v21 = vpop.eup %2067 }
 0x1bc   : > { %1010 = vperm.xlu1 %2034, %v2804_v47   ;;  %v2857_v13 = vpop.eup %2069  ;;  %2085 = vpow2.f32 %v970_v46 }
 0x1bd   : > { %691 = vperm.xlu0 %2033, %v2843_v31   ;;  %v2859_v18 = vpop.eup %2071 }
 0x1be   : > { %v2865_v24 = vpop.eup %2073 }
 0x1bf   : > { %v2867_v37 = vpop.eup %2075 }
 0x1c0   : > { %671 = vperm.xlu1 %2034, %v2851_v21   ;;  %v2871_v32 = vpop.eup %2077 }
 0x1c1   : > { %701 = vperm.xlu0 %2033, %v2849_v8   ;;  %v2873_v34 = vpop.eup %2079 }
 0x1c2   : > { %v2877_v58 = vpop.eup %2081 }
 0x1c3   : > { %v2880_v5 = vpop.eup %2083 }
 0x1c4   : > { %676 = vperm.xlu1 %2034, %v2857_v13  }
 0x1c5   : > { %1102 = vperm.xlu0 %2033, %v2859_v18  }
 0x1c6   : > { %v2883_v39 = vpop.eup %2085 }
 0x1c8   : > { %686 = vperm.xlu1 %2034, %v2865_v24  }
 0x1c9   : > { %1117 = vperm.xlu0 %2033, %v2867_v37  }
 0x1cc   : > { %696 = vperm.xlu1 %2034, %v2871_v32  }
 0x1cd   : > { %1127 = vperm.xlu0 %2033, %v2873_v34  }
 0x1d0   : > { %1107 = vperm.xlu1 %2034, %v2877_v58  }
 0x1d4   : > { %1112 = vperm.xlu1 %2034, %v2880_v5  }
 0x1d8   : > { %1122 = vperm.xlu1 %2034, %v2883_v39  }
 0x20f   : > { %v546_v40 = vpop.permute.xlu0 %545 }
 0x210   : > { %v583_v43 = vsub.f32 %v2615_v52, %v546_v40 }
 0x212   : > { %v591_v38 = vmul.f32 1.442695, %v583_v43 }
 0x213   : > { %v551_v44 = vpop.permute.xlu1 %550 }
 0x214   : > { %2087 = vpow2.f32 %v591_v38  ;;  %v584_v50 = vsub.f32 %v2624_v3, %v551_v44 }
 0x216   : > { %v593_v16 = vmul.f32 1.442695, %v584_v50 }
 0x217   : > { %v981_v51 = vpop.permute.xlu1 %980 }
 0x218   : > { %2089 = vpow2.f32 %v593_v16  ;;  %v1018_v53 = vsub.f32 %v2632_v17, %v981_v51 }
 0x21a   : > { %v1026_v59 = vmul.f32 1.442695, %v1018_v53 }
 0x21b   : > { %v986_v62 = vpop.permute.xlu1 %985 }
 0x21c   : > { %v1019_v29 = vsub.f32 %v2620_v61, %v986_v62  ;;  %2091 = vpow2.f32 %v1026_v59 }
 0x21e   : > { %v2088_v35 = vpop.eup %2087  ;;  %v1028_v1 = vmul.f32 1.442695, %v1019_v29 }
 0x21f   : > { %623 = vadd.xlane.f32.xlu1 %v2088_v35  ;;  %v556_v19 = vpop.permute.xlu1 %555  ;;  %v571_v27 = vpop.permute.xlu0 %570 }
 0x220   : > { %2093 = vpow2.f32 %v1028_v1  ;;  %v585_v52 = vsub.f32 %v2639_v30, %v556_v19  ;;  %v588_v17 = vsub.f32 %v2648_v42, %v571_v27 }
 0x222   : > { %v2090_v10 = vpop.eup %2089  ;;  %v595_v3 = vmul.f32 1.442695, %v585_v52  ;;  %v601_v14 = vmul.f32 1.442695, %v588_v17 }
 0x223   : > { %625 = vadd.xlane.f32.xlu0 %v2090_v10  ;;  %v561_v26 = vpop.permute.xlu1 %560  ;;  %v712_v11 = vpack.c.bf16 %v2090_v10, %v2088_v35 }
 0x224   : > { %v586_v48 = vsub.f32 %v2629_v7, %v561_v26  ;;  %2095 = vpow2.f32 %v595_v3 }
 0x225   : > { %1879 = vmatprep.mubr.bf16.mxu0 %v712_v11 }
 0x226   : > { %v597_v61 = vmul.f32 1.442695, %v586_v48  ;;  %v1006_v54 = vpop.permute.xlu0 %1005  ;;  %v2092_v30 = vpop.eup %2091 }
 0x227   : > { %v991_v36 = vpop.permute.xlu1 %990  ;;  %v1023_v44 = vsub.f32 %v2660_v57, %v1006_v54 }
 0x228   : > { %2097 = vpow2.f32 %v597_v61  ;;  %v1020_v15 = vsub.f32 %v2646_v41, %v991_v36 }
 0x229   : > { %2099 = vpow2.f32 %v601_v14  ;;  %v1036_v53 = vmul.f32 1.442695, %v1023_v44 }
 0x22a   : > { %v2894_v56 = vpop.eup %2093  ;;  %v1030_v0 = vmul.f32 1.442695, %v1020_v15 }
 0x22b   : > { %v581_v22 = vpop.permute.xlu0 %580  ;;  %v996_v23 = vpop.permute.xlu1 %995  ;;  %v1148_v46 = vpack.c.bf16 %v2894_v56, %v2092_v30 }
 0x22c   : > { %v590_v7 = vsub.f32 %v2667_v4, %v581_v22  ;;  %v1021_v42 = vsub.f32 %v2636_v20, %v996_v23  ;;  %2101 = vpow2.f32 %v1030_v0  ;;  %v974_v0 = vmul.f32 1.442695, %v960_v12 }
 0x22d   : > { %1903 = vmatprep.mubr.bf16.mxu1 %v1148_v46  ;;  %v976_v23 = vmul.f32 1.442695, %v961_v60 }
 0x22e   : > { %v605_v40 = vmul.f32 1.442695, %v590_v7  ;;  %v1032_v43 = vmul.f32 1.442695, %v1021_v42  ;;  %v2096_v38 = vpop.eup %2095 }
 0x22f   : > { %v566_v41 = vpop.permute.xlu1 %565  ;;  %627 = vadd.xlane.f32.xlu0 %v2096_v38 }
 0x230   : > { %2103 = vpow2.f32 %v605_v40  ;;  %v587_v50 = vsub.f32 %v2653_v45, %v566_v41  ;;  %v1016_v20 = vpop.permute.xlu0 %1015  ;;  %v607_v41 = vld [vmem:[#allocation3] sm:$0xff] }
 0x231   : > { %2105 = vpow2.f32 %v1032_v43  ;;  %v1025_v35 = vsub.f32 %v2673_v9, %v1016_v20 }
 0x232   : > { %v2098_v16 = vpop.eup %2097  ;;  %v599_v51 = vmul.f32 1.442695, %v587_v50  ;;  %v615_v50 = vmul.f32 %v2825_v63, %v607_v41  ;;  %v1044_v41 = vld [vmem:[#allocation3 + $0x48] sm:$0xff] }
 0x233   : > { %629 = vadd.xlane.f32.xlu1 %v2098_v16  ;;  %v1001_v4 = vpop.permute.xlu1 %1000  ;;  %v713_v59 = vpack.c.bf16 %v2098_v16, %v2096_v38  ;;  %v2100_v29 = vpop.eup %2099  ;;  %v1040_v3 = vmul.f32 1.442695, %v1025_v35  ;;  %v610_v35 = vld [vmem:[#allocation3 + $0x18] sm:$0xff] }
 0x234   : > { %2107 = vpow2.f32 %v599_v51  ;;  %v1022_v62 = vsub.f32 %v2658_v55, %v1001_v4  ;;  %v2920_v47 = vpop.permute.xlu0 %666  ;;  %v618_v63 = vmul.f32 %v2834_v25, %v610_v35  ;;  %v1047_v35 = vld [vmem:[#allocation3 + $0x60] sm:$0xff] }
 0x235   : > { %1880 = vmatmul.mubr.bf16.vlgmr.msra.gmra.mrb[0].mxu0 %v713_v59  ;;  %2109 = vpow2.f32 %v1036_v53  ;;  %v608_v53 = vld [vmem:[#allocation3 + $0x8] sm:$0xff] }
 0x236   : > { %v1034_v57 = vmul.f32 1.442695, %v1022_v62  ;;  %v2102_v19 = vpop.eup %2101  ;;  %v616_v59 = vmul.f32 %v2851_v21, %v608_v53 }
 0x237   : > { %633 = vadd.xlane.f32.xlu1 %v2100_v29  ;;  %v576_v1 = vpop.permute.xlu1 %575 }
 0x238   : > { %2111 = vpow2.f32 %v1034_v57  ;;  %v589_v45 = vsub.f32 %v2665_v2, %v576_v1  ;;  %v2924_v46 = vpop.permute.xlu0 %681 }
 0x23a   : > { %v2104_v52 = vpop.eup %2103  ;;  %v603_v27 = vmul.f32 1.442695, %v589_v45 }
 0x23b   : > { %v2106_v10 = vpop.eup %2105  ;;  %637 = vadd.xlane.f32.xlu1 %v2104_v52  ;;  %v1011_v26 = vpop.permute.xlu1 %1010 }
 0x23c   : > { %2113 = vpow2.f32 %v603_v27  ;;  %v1024_v55 = vsub.f32 %v2671_v6, %v1011_v26  ;;  %v1149_v11 = vpack.c.bf16 %v2106_v10, %v2102_v19  ;;  %v2928_v42 = vpop.permute.xlu0 %691 }
 0x23d   : > { %2115 = vpow2.f32 %v1040_v3  ;;  %v614_v3 = vld [vmem:[#allocation3 + $0x38] sm:$0xff] }
 0x23e   : > { %v2108_v17 = vpop.eup %2107  ;;  %v1038_v48 = vmul.f32 1.442695, %v1024_v55  ;;  %1904 = vmatmul.mubr.bf16.vlgmr.msra.gmra.mrb[0].mxu1 %v1149_v11  ;;  %v611_v11 = vld [vmem:[#allocation3 + $0x20] sm:$0xff] }
 0x23f   : > { %1059 = vadd.xlane.f32.xlu1 %v2092_v30  ;;  %631 = vadd.xlane.f32.xlu0 %v2108_v17  ;;  %v714_v9 = vpack.c.bf16 %v2100_v29, %v2108_v17  ;;  %v2110_v2 = vpop.eup %2109  ;;  %v2918_v28 = vpop.permute.xlu1 %671  ;;  %v609_v29 = vld [vmem:[#allocation3 + $0x10] sm:$0xff]  ;;  %v1043_v17 = vld [vmem:[#allocation3 + $0x40] sm:$0xff] }
 0x240   : > { %2117 = vpow2.f32 %v1038_v48  ;;  %v2932_v33 = vpop.permute.xlu0 %701  ;;  %v617_v57 = vmul.f32 %v2857_v13, %v609_v29  ;;  %v622_v13 = vmul.f32 %v2849_v8, %v614_v3  ;;  %v619_v48 = vmul.f32 %v2865_v24, %v611_v11  ;;  %v657_v3 = vld [vmem:[#allocation4 + $0x8] sm:$0xff] }
 0x241   : > { %1883 = vmatprep.mubr.bf16.mxu0 %v714_v9  ;;  %2119 = vpow2.f32 %v974_v0  ;;  %v1051_v9 = vmul.f32 %v2859_v18, %v1043_v17 }
 0x242   : > { %v2112_v61 = vpop.eup %2111  ;;  %2121 = vpow2.f32 %v976_v23 }
 0x243   : > { %1065 = vadd.xlane.f32.xlu1 %v2106_v10  ;;  %v1150_v54 = vpack.c.bf16 %v2110_v2, %v2112_v61  ;;  %v2922_v12 = vpop.permute.xlu1 %676 }
 0x244   : > { %v2936_v60 = vpop.permute.xlu0 %1102 }
 0x245   : > { %1907 = vmatprep.mubr.bf16.mxu1 %v1150_v54 }
 0x246   : > { %v2114_v36 = vpop.eup %2113 }
 0x247   : > { %1069 = vadd.xlane.f32.xlu1 %v2110_v2  ;;  %635 = vadd.xlane.f32.xlu0 %v2114_v36  ;;  %v715_v14 = vpack.c.bf16 %v2104_v52, %v2114_v36  ;;  %v2116_v6 = vpop.eup %2115  ;;  %v2926_v7 = vpop.permute.xlu1 %686  ;;  %v612_v52 = vld [vmem:[#allocation3 + $0x28] sm:$0xff] }
 0x248   : > { %v2940_v38 = vpop.permute.xlu0 %1117  ;;  %v620_v21 = vmul.f32 %v2843_v31, %v612_v52  ;;  %v1046_v31 = vld [vmem:[#allocation3 + $0x58] sm:$0xff] }
 0x249   : > { %1884 = vmatmul.mubr.bf16.gmra.mrb[4].mxu0 %v715_v14  ;;  %v1054_v8 = vmul.f32 %v2867_v37, %v1046_v31  ;;  %v1052_v37 = vmul.f32 %v2877_v58, %v1044_v41  ;;  %v1055_v58 = vmul.f32 %v2883_v39, %v1047_v35  ;;  %v1094_v31 = vld [vmem:[#allocation4 + $0x50] sm:$0xff] }
 0x24a   : > { %v2118_v15 = vpop.eup %2117  ;;  %v662_v41 = vld [vmem:[#allocation4 + $0x30] sm:$0xff] }
 0x24b   : > { %1073 = vadd.xlane.f32.xlu1 %v2116_v6  ;;  %1061 = vadd.xlane.f32.xlu0 %v2894_v56  ;;  %v1151_v30 = vpack.c.bf16 %v2116_v6, %v2118_v15  ;;  %v2909_v22 = vpop.eup %2119  ;;  %v2930_v40 = vpop.permute.xlu1 %696  ;;  %v613_v6 = vld [vmem:[#allocation3 + $0x30] sm:$0xff] }
 0x24c   : > { %v2915_v56 = vpop.eup %2121  ;;  %v2945_v16 = vpop.permute.xlu0 %1127  ;;  %v621_v24 = vmul.f32 %v2871_v32, %v613_v6 }
 0x24d   : > { %1908 = vmatmul.mubr.bf16.gmra.mrb[4].mxu1 %v1151_v30 }
 0x24f   : > { %1063 = vadd.xlane.f32.xlu0 %v2102_v19  ;;  %v2934_v49 = vpop.permute.xlu1 %1107 }
 0x253   : > { %1067 = vadd.xlane.f32.xlu0 %v2112_v61  ;;  %v2938_v43 = vpop.permute.xlu1 %1112 }
 0x257   : > { %1071 = vadd.xlane.f32.xlu0 %v2118_v15  ;;  %v2942_v44 = vpop.permute.xlu1 %1122  ;;  %v1048_v15 = vld [vmem:[#allocation3 + $0x68] sm:$0xff] }
 0x258   : > { %v1056_v18 = vmul.f32 %v2873_v34, %v1048_v15 }
 0x25c   : > { %1132 = vperm.xlu1 %2034, %v2909_v22  }
 0x26d   : > { %1137 = vperm.xlu0 %2033, %v2915_v56  }
 0x2ac   : > { %v624_v51 = vpop.xlane.xlu1 %623 }
 0x2ad   : > { %v639_v4 = vadd.f32 %v624_v51, %v615_v50  ;;  %v1050_v50 = vld [vmem:[#allocation3 + $0x78] sm:$0xff] }
 0x2af   : > { %648 = vst.msk [vmem:[#allocation3] sm:$0xff] %vm647_vm1, %v639_v4  ;;  %v1058_v4 = vmul.f32 %v2915_v56, %v1050_v50  ;;  %v1049_v56 = vld [vmem:[#allocation3 + $0x70] sm:$0xff]  ;;  %v663_v50 = vld [vmem:[#allocation4 + $0x38] sm:$0xff] }
 0x2b0   : > { %v626_v20 = vpop.xlane.xlu0 %625 }
 0x2b1   : > { %v640_v62 = vadd.f32 %v626_v20, %v616_v59 }
 0x2b3   : > { %649 = vst.msk [vmem:[#allocation3 + $0x8] sm:$0xff] %vm647_vm1, %v640_v62  ;;  %v1045_v62 = vld [vmem:[#allocation3 + $0x50] sm:$0xff] }
 0x2b4   : > { %v1053_v34 = vmul.f32 %v2880_v5, %v1045_v62  ;;  %v656_v5 = vld [vmem:[#allocation4] sm:$0xff] }
 0x2bc   : > { %v628_v1 = vpop.xlane.xlu0 %627 }
 0x2bd   : > { %v641_v45 = vadd.f32 %v628_v1, %v617_v57 }
 0x2bf   : > { %650 = vst.msk [vmem:[#allocation3 + $0x10] sm:$0xff] %vm647_vm1, %v641_v45 }
 0x2c0   : > { %v630_v19 = vpop.xlane.xlu1 %629 }
 0x2c1   : > { %v642_v27 = vadd.f32 %v630_v19, %v618_v63  ;;  %v1057_v19 = vmul.f32 %v2909_v22, %v1049_v56 }
 0x2c3   : > { %651 = vst.msk [vmem:[#allocation3 + $0x18] sm:$0xff] %vm647_vm1, %v642_v27 }
 0x2c4   : > { %v634_v10 = vpop.xlane.xlu1 %633 }
 0x2c5   : > { %v644_v26 = vadd.f32 %v634_v10, %v620_v21  ;;  %v658_v21 = vld [vmem:[#allocation4 + $0x10] sm:$0xff]  ;;  %v659_v10 = vld [vmem:[#allocation4 + $0x18] sm:$0xff] }
 0x2c7   : > { %653 = vst.msk [vmem:[#allocation3 + $0x28] sm:$0xff] %vm647_vm1, %v644_v26  ;;  %v706_v26 = vmul.f32 %v2922_v12, %v658_v21  ;;  %v1095_v12 = vld [vmem:[#allocation4 + $0x58] sm:$0xff] }
 0x2c8   : > { %v638_v55 = vpop.xlane.xlu1 %637 }
 0x2c9   : > { %v646_v25 = vadd.f32 %v638_v55, %v622_v13  ;;  %v704_v13 = vmul.f32 %v2920_v47, %v656_v5  ;;  %v707_v55 = vmul.f32 %v2924_v46, %v659_v10  ;;  %v1093_v47 = vld [vmem:[#allocation4 + $0x48] sm:$0xff] }
 0x2ca   : > { %v1141_v15 = vmul.f32 %v2934_v49, %v1093_v47 }
 0x2cb   : > { %655 = vst.msk [vmem:[#allocation3 + $0x38] sm:$0xff] %vm647_vm1, %v646_v25  ;;  %v705_v25 = vmul.f32 %v2918_v28, %v657_v3  ;;  %v1143_v28 = vmul.f32 %v2940_v38, %v1095_v12 }
 0x2cc   : > { %v632_v2 = vpop.xlane.xlu0 %631  ;;  %v1060_v61 = vpop.xlane.xlu1 %1059 }
 0x2cd   : > { %v643_v54 = vadd.f32 %v632_v2, %v619_v48  ;;  %v1075_v36 = vadd.f32 %v1060_v61, %v1051_v9 }
 0x2cf   : > { %652 = vst.msk [vmem:[#allocation3 + $0x20] sm:$0xff] %vm647_vm1, %v643_v54  ;;  %1083 = vst.msk [vmem:[#allocation3 + $0x40] sm:$0xff] %vm647_vm1, %v1075_v36  ;;  %v1092_v54 = vld [vmem:[#allocation4 + $0x40] sm:$0xff]  ;;  %v1142_v36 = vmul.f32 %v2938_v43, %v1094_v31 }
 0x2d0   : > { %v1066_v14 = vpop.xlane.xlu1 %1065  ;;  %v1140_v46 = vmul.f32 %v2936_v60, %v1092_v54  ;;  %v660_v43 = vld [vmem:[#allocation4 + $0x20] sm:$0xff]  ;;  %v661_v60 = vld [vmem:[#allocation4 + $0x28] sm:$0xff] }
 0x2d1   : > { %v1078_v30 = vadd.f32 %v1066_v14, %v1054_v8  ;;  %v708_v38 = vmul.f32 %v2926_v7, %v660_v43 }
 0x2d3   : > { %1086 = vst.msk [vmem:[#allocation3 + $0x58] sm:$0xff] %vm647_vm1, %v1078_v30 }
 0x2d4   : > { %v636_v0 = vpop.xlane.xlu0 %635  ;;  %v1070_v23 = vpop.xlane.xlu1 %1069 }
 0x2d5   : > { %v645_v51 = vadd.f32 %v636_v0, %v621_v24  ;;  %v1080_v53 = vadd.f32 %v1070_v23, %v1056_v18 }
 0x2d7   : > { %654 = vst.msk [vmem:[#allocation3 + $0x30] sm:$0xff] %vm647_vm1, %v645_v51  ;;  %1088 = vst.msk [vmem:[#allocation3 + $0x68] sm:$0xff] %vm647_vm1, %v1080_v53  ;;  %v710_v51 = vmul.f32 %v2930_v40, %v662_v41  ;;  %v1098_v53 = vld [vmem:[#allocation4 + $0x70] sm:$0xff] }
 0x2d8   : > { %v1062_v59 = vpop.xlane.xlu0 %1061  ;;  %v1074_v20 = vpop.xlane.xlu1 %1073 }
 0x2d9   : > { %v1076_v32 = vadd.f32 %v1062_v59, %v1052_v37  ;;  %v1082_v29 = vadd.f32 %v1074_v20, %v1058_v4  ;;  %v711_v4 = vmul.f32 %v2932_v33, %v663_v50  ;;  %v1096_v59 = vld [vmem:[#allocation4 + $0x60] sm:$0xff] }
 0x2da   : > { %v1144_v7 = vmul.f32 %v2942_v44, %v1096_v59  ;;  %v1279_v44 = vld [vmem:[#allocation3 + $0x10] sm:$0xff] (!%p1775_p0) }
 0x2db   : > { %1084 = vst.msk [vmem:[#allocation3 + $0x48] sm:$0xff] %vm647_vm1, %v1076_v32  ;;  %1090 = vst.msk [vmem:[#allocation3 + $0x78] sm:$0xff] %vm647_vm1, %v1082_v29  ;;  %v709_v32 = vmul.f32 %v2928_v42, %v661_v60  ;;  %v1099_v29 = vld [vmem:[#allocation4 + $0x78] sm:$0xff] }
 0x2dc   : > { %v1064_v57 = vpop.xlane.xlu0 %1063  ;;  %v1133_v37 = vpop.permute.xlu1 %1132 }
 0x2dd   : > { %v1077_v1 = vadd.f32 %v1064_v57, %v1053_v34 }
 0x2de   : > { %v1283_v31 = vld [vmem:[#allocation3 + $0x30] sm:$0xff] (!%p1775_p0) }
 0x2df   : > { %1085 = vst.msk [vmem:[#allocation3 + $0x50] sm:$0xff] %vm647_vm1, %v1077_v1  ;;  %v1097_v1 = vld [vmem:[#allocation4 + $0x68] sm:$0xff]  ;;  %v1291_v12 = vmax.f32 (!%p1775_p0), %v1283_v31, 1e-20 }
 0x2e0   : > { %v1068_v45 = vpop.xlane.xlu0 %1067  ;;  %v1145_v42 = vmul.f32 %v2945_v16, %v1097_v1  ;;  %v1287_v16 = vmax.f32 (!%p1775_p0), %v1279_v44, 1e-20 }
 0x2e1   : > { %v1079_v63 = vadd.f32 %v1068_v45, %v1055_v58  ;;  %v1146_v58 = vmul.f32 %v1133_v37, %v1098_v53 }
 0x2e2   : > { %2125 = vrcp.f32 (!%p1775_p0), %v1287_v16  ;;  %v1414_v47 = vld [vmem:[#allocation3 + $0x48] sm:$0xff] (!%p1775_p0) }
 0x2e3   : > { %1087 = vst.msk [vmem:[#allocation3 + $0x60] sm:$0xff] %vm647_vm1, %v1079_v63 }
 0x2e4   : > { %v1072_v52 = vpop.xlane.xlu0 %1071 }
 0x2e5   : > { %v1081_v27 = vadd.f32 %v1072_v52, %v1057_v19 }
 0x2e7   : > { %1089 = vst.msk [vmem:[#allocation3 + $0x70] sm:$0xff] %vm647_vm1, %v1081_v27 }
 0x2ea   : > { %v1417_v43 = vld [vmem:[#allocation3 + $0x60] sm:$0xff] (!%p1775_p0) }
 0x2ec   : > { %v1138_v34 = vpop.permute.xlu0 %1137 }
 0x2ed   : > { %v1147_v33 = vmul.f32 %v1138_v34, %v1099_v29 }
 0x2ee   : > { %v1419_v37 = vld [vmem:[#allocation3 + $0x70] sm:$0xff] (!%p1775_p0) }
 0x2ef   : > { %v1427_v59 = vmax.f32 (!%p1775_p0), %v1419_v37, 1e-20 }
 0x308   : > { %v1881_v39 = vpop.f32.mrb[0].mxu0 }
 0x309   : > { %v831_v11 = vadd.f32 %v1881_v39, %v706_v26  ;;  %v798_v17 = vpop.f32.mrb[1].mxu0  ;;  %v1277_v26 = vld [vmem:[#allocation3] sm:$0xff] (!%p1775_p0)  ;;  %v2351_v39 = vmov (!%p1775_p0), 0  }
 0x30a   : > { %v829_v22 = vadd.f32 %v798_v17, %v704_v13  ;;  %v1882_v48 = vpop.f32.mrb[2].mxu0  ;;  %v1280_v13 = vld [vmem:[#allocation3 + $0x18] sm:$0xff] (!%p1775_p0)  ;;  %2124 = vset.pattern.permute.xlu1 (!%p1775_p0), %v2351_v39  ;;  %2123 = vset.pattern.permute.xlu0 (!%p1775_p0), %v2351_v39  ;;  %v1278_v17 = vld [vmem:[#allocation3 + $0x8] sm:$0xff] (!%p1775_p0) }
 0x30b   : > { %839 = vst [vmem:[#allocation4 + $0x10] sm:$0xff] %v831_v11  ;;  %v832_v9 = vadd.f32 %v1882_v48, %v707_v55  ;;  %v801_v2 = vpop.f32.mrb[3].mxu0  ;;  %v1285_v55 = vmax.f32 (!%p1775_p0), %v1277_v26, 1e-20  ;;  %v1288_v11 = vmax.f32 (!%p1775_p0), %v1280_v13, 1e-20 }
 0x30c   : > { %837 = vst [vmem:[#allocation4] sm:$0xff] %v829_v22  ;;  %v830_v61 = vadd.f32 %v801_v2, %v705_v25  ;;  %v1282_v25 = vld [vmem:[#allocation3 + $0x28] sm:$0xff] (!%p1775_p0)  ;;  %v1286_v22 = vmax.f32 (!%p1775_p0), %v1278_v17, 1e-20  ;;  %v1281_v48 = vld [vmem:[#allocation3 + $0x20] sm:$0xff] (!%p1775_p0) }
 0x30d   : > { %840 = vst [vmem:[#allocation4 + $0x18] sm:$0xff] %v832_v9  ;;  %2127 = vrcp.f32 (!%p1775_p0), %v1285_v55  ;;  %v1290_v9 = vmax.f32 (!%p1775_p0), %v1282_v25, 1e-20  ;;  %v1289_v2 = vmax.f32 (!%p1775_p0), %v1281_v48, 1e-20 }
 0x30e   : > { %838 = vst [vmem:[#allocation4 + $0x8] sm:$0xff] %v830_v61  ;;  %2129 = vrcp.f32 (!%p1775_p0), %v1288_v11  ;;  %v1284_v61 = vld [vmem:[#allocation3 + $0x38] sm:$0xff] (!%p1775_p0) }
 0x30f   : > { %2131 = vrcp.f32 (!%p1775_p0), %v1286_v22  ;;  %v1292_v54 = vmax.f32 (!%p1775_p0), %v1284_v61, 1e-20 }
 0x310   : > { %2133 = vrcp.f32 (!%p1775_p0), %v1290_v9 }
 0x311   : > { %v1905_v8 = vpop.f32.mrb[0].mxu1  ;;  %2135 = vrcp.f32 (!%p1775_p0), %v1289_v2 }
 0x312   : > { %v1251_v14 = vadd.f32 %v1905_v8, %v1142_v36  ;;  %v1218_v6 = vpop.f32.mrb[1].mxu1  ;;  %v1413_v36 = vld [vmem:[#allocation3 + $0x40] sm:$0xff] (!%p1775_p0)  ;;  %2137 = vrcp.f32 (!%p1775_p0), %v1292_v54  ;;  %v1422_v8 = vmax.f32 (!%p1775_p0), %v1414_v47, 1e-20 }
 0x313   : > { %v1249_v30 = vadd.f32 %v1218_v6, %v1140_v46  ;;  %v1906_v24 = vpop.f32.mrb[2].mxu1  ;;  %v2126_v46 = vpop.eup (!%p1775_p0), %2125  ;;  %2139 = vrcp.f32 (!%p1775_p0), %v1291_v12  ;;  %v1416_v6 = vld [vmem:[#allocation3 + $0x58] sm:$0xff] (!%p1775_p0) }
 0x314   : > { %1259 = vst [vmem:[#allocation4 + $0x50] sm:$0xff] %v1251_v14  ;;  %v1252_v18 = vadd.f32 %v1906_v24, %v1143_v28  ;;  %v1221_v0 = vpop.f32.mrb[3].mxu1  ;;  %1321 = vperm.xlu1 (!%p1775_p0), %2124, %v2126_v46   ;;  %v1421_v14 = vmax.f32 (!%p1775_p0), %v1413_v36, 1e-20  ;;  %2141 = vrcp.f32 (!%p1775_p0), %v1422_v8 }
 0x315   : > { %1257 = vst [vmem:[#allocation4 + $0x40] sm:$0xff] %v1249_v30  ;;  %v1250_v23 = vadd.f32 %v1221_v0, %v1141_v15  ;;  %v1415_v30 = vld [vmem:[#allocation3 + $0x50] sm:$0xff] (!%p1775_p0) }
 0x316   : > { %1260 = vst [vmem:[#allocation4 + $0x58] sm:$0xff] %v1252_v18  ;;  %v1424_v18 = vmax.f32 (!%p1775_p0), %v1416_v6, 1e-20  ;;  %2143 = vrcp.f32 (!%p1775_p0), %v1421_v14  ;;  %v1423_v0 = vmax.f32 (!%p1775_p0), %v1415_v30, 1e-20 }
 0x317   : > { %1258 = vst [vmem:[#allocation4 + $0x48] sm:$0xff] %v1250_v23  ;;  %v2128_v28 = vpop.eup (!%p1775_p0), %2127  ;;  %v1418_v23 = vld [vmem:[#allocation3 + $0x68] sm:$0xff] (!%p1775_p0) }
 0x318   : > { %v2130_v15 = vpop.eup (!%p1775_p0), %2129  ;;  %1311 = vperm.xlu0 (!%p1775_p0), %2123, %v2128_v28   ;;  %2145 = vrcp.f32 (!%p1775_p0), %v1424_v18  ;;  %v1426_v60 = vmax.f32 (!%p1775_p0), %v1418_v23, 1e-20 }
 0x319   : > { %v2132_v24 = vpop.eup (!%p1775_p0), %2131  ;;  %1326 = vperm.xlu1 (!%p1775_p0), %2124, %v2130_v15   ;;  %2147 = vrcp.f32 (!%p1775_p0), %v1423_v0 }
 0x31a   : > { %v2134_v41 = vpop.eup (!%p1775_p0), %2133  ;;  %2149 = vrcp.f32 (!%p1775_p0), %v1426_v60 }
 0x31b   : > { %v2136_v50 = vpop.eup (!%p1775_p0), %2135  ;;  %v1439_v18 = vld [vmem:[#allocation4 + $0x50] sm:$0xff] (!%p1775_p0) }
 0x31c   : > { %v1885_v49 = vpop.f32.mrb[4].mxu0  ;;  %1316 = vperm.xlu0 (!%p1775_p0), %2123, %v2132_v24   ;;  %v2138_v53 = vpop.eup (!%p1775_p0), %2137  ;;  %v1437_v54 = vld [vmem:[#allocation4 + $0x40] sm:$0xff] (!%p1775_p0) }
 0x31d   : > { %v835_v20 = vadd.f32 %v1885_v49, %v710_v51  ;;  %v814_v62 = vpop.f32.mrb[5].mxu0  ;;  %1336 = vperm.xlu1 (!%p1775_p0), %2124, %v2134_v41   ;;  %v1425_v51 = vmax.f32 (!%p1775_p0), %v1417_v43, 1e-20  ;;  %v2140_v49 = vpop.eup (!%p1775_p0), %2139  ;;  %v1440_v30 = vld [vmem:[#allocation4 + $0x58] sm:$0xff] (!%p1775_p0) }
 0x31e   : > { %v833_v57 = vadd.f32 %v814_v62, %v708_v38  ;;  %v1886_v35 = vpop.f32.mrb[6].mxu0  ;;  %v1420_v38 = vld [vmem:[#allocation3 + $0x78] sm:$0xff] (!%p1775_p0)  ;;  %v1438_v2 = vld [vmem:[#allocation4 + $0x48] sm:$0xff] (!%p1775_p0) }
 0x31f   : > { %843 = vst [vmem:[#allocation4 + $0x30] sm:$0xff] %v835_v20  ;;  %v836_v40 = vadd.f32 %v1886_v35, %v711_v4  ;;  %v817_v45 = vpop.f32.mrb[7].mxu0  ;;  %v1428_v4 = vmax.f32 (!%p1775_p0), %v1420_v38, 1e-20  ;;  %2151 = vrcp.f32 (!%p1775_p0), %v1425_v51  ;;  %v2142_v20 = vpop.eup (!%p1775_p0), %2141 }
 0x320   : > { %841 = vst [vmem:[#allocation4 + $0x20] sm:$0xff] %v833_v57  ;;  %v834_v56 = vadd.f32 %v817_v45, %v709_v32  ;;  %v1909_v63 = vpop.f32.mrb[4].mxu1  ;;  %1276 = sbr.rel (%p1775_p0) target bundleno = 975 (0x3cf), region = 48  ;;  %1331 = vperm.xlu0 (!%p1775_p0), %2123, %v2136_v50   ;;  %v2144_v62 = vpop.eup (!%p1775_p0), %2143  ;;  %v1303_v45 = vld [vmem:[#allocation4 + $0x10] sm:$0xff] (!%p1775_p0) }
 0x321   : > { %844 = vst [vmem:[#allocation4 + $0x38] sm:$0xff] %v836_v40  ;;  %v1255_v19 = vadd.f32 %v1909_v63, %v1146_v58  ;;  %v1234_v52 = vpop.f32.mrb[5].mxu1  ;;  %1346 = vperm.xlu1 (!%p1775_p0), %2124, %v2138_v53   ;;  %2153 = vrcp.f32 (!%p1775_p0), %v1428_v4  ;;  %v1302_v63 = vld [vmem:[#allocation4 + $0x8] sm:$0xff] (!%p1775_p0) }
 0x322   : > { %842 = vst [vmem:[#allocation4 + $0x28] sm:$0xff] %v834_v56  ;;  %v1253_v27 = vadd.f32 %v1234_v52, %v1144_v7  ;;  %v1910_v21 = vpop.f32.mrb[6].mxu1  ;;  %2155 = vrcp.f32 (!%p1775_p0), %v1427_v59  ;;  %v2146_v32 = vpop.eup (!%p1775_p0), %2145  ;;  %v1301_v7 = vld [vmem:[#allocation4] sm:$0xff] (!%p1775_p0) }
 0x323   : > { %1263 = vst [vmem:[#allocation4 + $0x70] sm:$0xff] %v1255_v19  ;;  %v1256_v5 = vadd.f32 %v1910_v21, %v1147_v33  ;;  %v1237_v10 = vpop.f32.mrb[7].mxu1  ;;  %v2148_v29 = vpop.eup (!%p1775_p0), %2147  ;;  %v1304_v19 = vld [vmem:[#allocation4 + $0x18] sm:$0xff] (!%p1775_p0) }
 0x324   : > { %1261 = vst [vmem:[#allocation4 + $0x60] sm:$0xff] %v1253_v27  ;;  %v1254_v3 = vadd.f32 %v1237_v10, %v1145_v42  ;;  %1341 = vperm.xlu0 (!%p1775_p0), %2123, %v2140_v49   ;;  %v2150_v34 = vpop.eup (!%p1775_p0), %2149 }
 0x325   : > { %1264 = vst [vmem:[#allocation4 + $0x78] sm:$0xff] %v1256_v5  ;;  %1452 = vperm.xlu1 (!%p1775_p0), %2124, %v2142_v20  }
 0x326   : > { %1262 = vst [vmem:[#allocation4 + $0x68] sm:$0xff] %v1254_v3  ;;  %v1307_v31 = vld [vmem:[#allocation4 + $0x30] sm:$0xff] (!%p1775_p0) }
 0x327   : > { %v1305_v39 = vld [vmem:[#allocation4 + $0x20] sm:$0xff] }
 0x328   : > { %1447 = vperm.xlu0 %2123, %v2144_v62   ;;  %v1308_v9 = vld [vmem:[#allocation4 + $0x38] sm:$0xff] }
 0x329   : > { %1462 = vperm.xlu1 %2124, %v2146_v32   ;;  %v2152_v57 = vpop.eup %2151  ;;  %v1306_v26 = vld [vmem:[#allocation4 + $0x28] sm:$0xff] }
 0x32b   : > { %v2154_v35 = vpop.eup %2153  ;;  %v1441_v20 = vld [vmem:[#allocation4 + $0x60] sm:$0xff] }
 0x32c   : > { %1457 = vperm.xlu0 %2123, %v2148_v29   ;;  %v2156_v1 = vpop.eup %2155 }
 0x32d   : > { %1472 = vperm.xlu1 %2124, %v2150_v34   ;;  %v1442_v4 = vld [vmem:[#allocation4 + $0x68] sm:$0xff] }
 0x330   : > { %1467 = vperm.xlu0 %2123, %v2152_v57  }
 0x331   : > { %1482 = vperm.xlu1 %2124, %v2154_v35  }
 0x334   : > { %1477 = vperm.xlu0 %2123, %v2156_v1  }
 0x393   : > { %v1322_v58 = vpop.permute.xlu1 %1321 }
 0x394   : > { %v2993_v33 = vmul.f32 %v1322_v58, %v1303_v45  ;;  %v1444_v45 = vld [vmem:[#allocation4 + $0x78] sm:$0xff] }
 0x396   : > { %v1367_v10 = vmin.f32 %v2993_v33, 0.0  ;;  %vm1359_vm2 = vcmp.gt.f32.partialorder %v2993_v33, 0.0 }
 0x397   : > { %v1312_v40 = vpop.permute.xlu0 %1311 }
 0x398   : > { %v1327_v56 = vpop.permute.xlu1 %1326  ;;  %v2995_v42 = vmul.f32 %v1312_v40, %v1301_v7  ;;  %v1377_v11 = vmul.f32 1.442695, %v1367_v10 }
 0x399   : > { %v2999_v21 = vmul.f32 %v1327_v56, %v1304_v19 }
 0x39a   : > { %v1365_v44 = vmin.f32 %v2995_v42, 0.0  ;;  %2157 = vpow2.f32 %v1377_v11  ;;  %vm1357_vm3 = vcmp.gt.f32.partialorder %v2995_v42, 0.0 }
 0x39b   : > { %v1317_v52 = vpop.permute.xlu0 %1316  ;;  %v1368_v16 = vmin.f32 %v2999_v21, 0.0  ;;  %vm1360_vm7 = vcmp.gt.f32.partialorder %v2999_v21, 0.0 }
 0x39c   : > { %v2997_v27 = vmul.f32 %v1317_v52, %v1302_v63  ;;  %v1337_v5 = vpop.permute.xlu1 %1336  ;;  %v1373_v22 = vmul.f32 1.442695, %v1365_v44  ;;  %v1443_v63 = vld [vmem:[#allocation4 + $0x70] sm:$0xff] }
 0x39d   : > { %v3005_v17 = vmul.f32 %v1337_v5, %v1306_v26  ;;  %v1379_v12 = vmul.f32 1.442695, %v1368_v16 }
 0x39e   : > { %v1366_v13 = vmin.f32 %v2997_v27, 0.0  ;;  %2159 = vpow2.f32 %v1373_v22  ;;  %vm1358_vm4 = vcmp.gt.f32.partialorder %v2997_v27, 0.0 }
 0x39f   : > { %v1332_v3 = vpop.permute.xlu0 %1331  ;;  %v1370_v36 = vmin.f32 %v3005_v17, 0.0  ;;  %vm1362_vm8 = vcmp.gt.f32.partialorder %v3005_v17, 0.0 }
 0x3a0   : > { %v1347_v55 = vpop.permute.xlu1 %1346  ;;  %v3007_v48 = vmul.f32 %v1332_v3, %v1305_v39  ;;  %v1375_v61 = vmul.f32 1.442695, %v1366_v13 }
 0x3a1   : > { %v3010_v46 = vmul.f32 %v1347_v55, %v1308_v9  ;;  %v1383_v41 = vmul.f32 1.442695, %v1370_v36 }
 0x3a2   : > { %v1369_v14 = vmin.f32 %v3007_v48, 0.0  ;;  %2161 = vpow2.f32 %v1375_v61  ;;  %vm1361_vm11 = vcmp.gt.f32.partialorder %v3007_v48, 0.0 }
 0x3a3   : > { %v1342_v25 = vpop.permute.xlu0 %1341  ;;  %2163 = vpow2.f32 %v1379_v12  ;;  %v1372_v43 = vmin.f32 %v3010_v46, 0.0  ;;  %vm1364_vm14 = vcmp.gt.f32.partialorder %v3010_v46, 0.0 }
 0x3a4   : > { %v1453_v47 = vpop.permute.xlu1 %1452  ;;  %v3015_v6 = vmul.f32 %v1342_v25, %v1307_v31  ;;  %v1381_v38 = vmul.f32 1.442695, %v1369_v14  ;;  %v2158_v7 = vpop.eup %2157 }
 0x3a5   : > { %v3012_v8 = vmul.f32 %v1453_v47, %v1438_v2  ;;  %v1387_v29 = vmul.f32 1.442695, %v1372_v43 }
 0x3a6   : > { %v1371_v53 = vmin.f32 %v3015_v6, 0.0  ;;  %vm1363_vm15 = vcmp.gt.f32.partialorder %v3015_v6, 0.0 }
 0x3a7   : > { %v1448_v28 = vpop.permute.xlu0 %1447  ;;  %v1502_v24 = vmin.f32 %v3012_v8, 0.0  ;;  %vm1494_vm5 = vcmp.gt.f32.partialorder %v3012_v8, 0.0 }
 0x3a8   : > { %v3017_v15 = vmul.f32 %v1448_v28, %v1437_v54  ;;  %v1463_v23 = vpop.permute.xlu1 %1462  ;;  %v1385_v1 = vmul.f32 1.442695, %v1371_v53  ;;  %v2160_v19 = vpop.eup %2159 }
 0x3a9   : > { %v1511_v50 = vmul.f32 1.442695, %v1502_v24  ;;  %v3022_v60 = vmul.f32 %v1463_v23, %v1440_v30  ;;  %v1776_v9 = vadd.f32 -1.0, %v2160_v19 }
 0x3aa   : > { %v1501_v0 = vmin.f32 %v3017_v15, 0.0  ;;  %vm1493_vm6 = vcmp.gt.f32.partialorder %v3017_v15, 0.0 }
 0x3ab   : > { %v1458_v51 = vpop.permute.xlu0 %1457  ;;  %2165 = vpow2.f32 %v1511_v50  ;;  %v1504_v59 = vmin.f32 %v3022_v60, 0.0  ;;  %vm1496_vm9 = vcmp.gt.f32.partialorder %v3022_v60, 0.0 }
 0x3ac   : > { %v1509_v37 = vmul.f32 1.442695, %v1501_v0  ;;  %v3025_v49 = vmul.f32 %v1458_v51, %v1439_v18  ;;  %v1473_v32 = vpop.permute.xlu1 %1472  ;;  %v2162_v10 = vpop.eup %2161  ;;  %v1778_v18 = vadd.f32 -1.0, %v2158_v7  ;;  %v1397_v0 = vsel %vm1357_vm3, %v2995_v42, %v1776_v9 }
 0x3ad   : > { %v1515_v34 = vmul.f32 1.442695, %v1504_v59  ;;  %v3029_v57 = vmul.f32 %v1473_v32, %v1442_v4  ;;  %v2164_v13 = vpop.eup %2163  ;;  %v1777_v11 = vadd.f32 -1.0, %v2162_v10 }
 0x3ae   : > { %2167 = vpow2.f32 %v1509_v37  ;;  %v1503_v62 = vmin.f32 %v3025_v49, 0.0  ;;  %v1779_v28 = vadd.f32 -1.0, %v2164_v13  ;;  %vm1495_vm10 = vcmp.gt.f32.partialorder %v3025_v49, 0.0 }
 0x3af   : > { %2169 = vpow2.f32 %v1383_v41  ;;  %v1468_v35 = vpop.permute.xlu0 %1467  ;;  %v1506_v56 = vmin.f32 %v3029_v57, 0.0  ;;  %v1398_v14 = vsel %vm1358_vm4, %v2997_v27, %v1777_v11  ;;  %vm1498_vm12 = vcmp.gt.f32.partialorder %v3029_v57, 0.0 }
 0x3b0   : > { %2171 = vpow2.f32 %v1381_v38  ;;  %v1513_v58 = vmul.f32 1.442695, %v1503_v62  ;;  %v3031_v40 = vmul.f32 %v1468_v35, %v1441_v20  ;;  %v1483_v5 = vpop.permute.xlu1 %1482  ;;  %v1400_v4 = vsel %vm1360_vm7, %v2999_v21, %v1779_v28 }
 0x3b1   : > { %2173 = vpow2.f32 %v1515_v34  ;;  %v1519_v3 = vmul.f32 1.442695, %v1506_v56  ;;  %v3035_v44 = vmul.f32 %v1483_v5, %v1444_v45  ;;  %v1399_v20 = vsel %vm1359_vm2, %v2993_v33, %v1778_v18 }
 0x3b2   : > { %2175 = vpow2.f32 %v1513_v58  ;;  %v1505_v52 = vmin.f32 %v3031_v40, 0.0  ;;  %vm1497_vm13 = vcmp.gt.f32.partialorder %v3031_v40, 0.0 }
 0x3b3   : > { %2177 = vpow2.f32 %v1387_v29  ;;  %v1478_v26 = vpop.permute.xlu0 %1477  ;;  %v1508_v55 = vmin.f32 %v3035_v44, 0.0  ;;  %vm1500_vm0 = vcmp.gt.f32.partialorder %v3035_v44, 0.0 }
 0x3b4   : > { %2179 = vpow2.f32 %v1385_v1  ;;  %v1517_v39 = vmul.f32 1.442695, %v1505_v52  ;;  %v3037_v16 = vmul.f32 %v1478_v26, %v1443_v63 }
 0x3b5   : > { %2181 = vpow2.f32 %v1519_v3  ;;  %v2166_v22 = vpop.eup %2165  ;;  %v1523_v2 = vmul.f32 1.442695, %v1508_v55 }
 0x3b6   : > { %2183 = vpow2.f32 %v1517_v39  ;;  %v1507_v25 = vmin.f32 %v3037_v16, 0.0  ;;  %v1785_v31 = vadd.f32 -1.0, %v2166_v22  ;;  %vm1499_vm1 = vcmp.gt.f32.partialorder %v3037_v16, 0.0 }
 0x3b7   : > { %2185 = vpow2.f32 %v1523_v2 }
 0x3b8   : > { %v2168_v61 = vpop.eup %2167  ;;  %v1521_v54 = vmul.f32 1.442695, %v1507_v25  ;;  %v1534_v30 = vsel %vm1494_vm5, %v3012_v8, %v1785_v31 }
 0x3b9   : > { %v2170_v12 = vpop.eup %2169  ;;  %v1784_v47 = vadd.f32 -1.0, %v2168_v61  ;;  %v1542_v23 = vadd.f32 %v1534_v30, %v1398_v14 }
 0x3ba   : > { %v2172_v36 = vpop.eup %2171  ;;  %2187 = vpow2.f32 %v1521_v54  ;;  %v1781_v38 = vadd.f32 -1.0, %v2170_v12 }
 0x3bb   : > { %v2174_v24 = vpop.eup %2173  ;;  %v1533_v41 = vsel %vm1493_vm6, %v3017_v15, %v1784_v47  ;;  %v1550_v8 = vmul.f32 0.5, %v1542_v23  ;;  %v1780_v62 = vadd.f32 -1.0, %v2172_v36 }
 0x3bc   : > { %v2176_v43 = vpop.eup %2175  ;;  %v1541_v50 = vadd.f32 %v1533_v41, %v1397_v0  ;;  %v1787_v51 = vadd.f32 -1.0, %v2174_v24 }
 0x3bd   : > { %v2178_v27 = vpop.eup %2177  ;;  %v1786_v53 = vadd.f32 -1.0, %v2176_v43  ;;  %v1401_v63 = vsel %vm1361_vm11, %v3007_v48, %v1780_v62 }
 0x3be   : > { %v2180_v37 = vpop.eup %2179  ;;  %v1549_v42 = vmul.f32 0.5, %v1541_v50  ;;  %v1536_v59 = vsel %vm1496_vm9, %v3022_v60, %v1787_v51  ;;  %v1402_v60 = vsel %vm1362_vm8, %v3005_v17, %v1781_v38  ;;  %v1783_v7 = vadd.f32 -1.0, %v2178_v27 }
 0x3bf   : > { %v2182_v15 = vpop.eup %2181  ;;  %v1544_v32 = vadd.f32 %v1536_v59, %v1400_v4  ;;  %v1535_v29 = vsel %vm1495_vm10, %v3025_v49, %v1786_v53  ;;  %v1782_v19 = vadd.f32 -1.0, %v2180_v37 }
 0x3c0   : > { %v2184_v34 = vpop.eup %2183  ;;  %v1819_v35 = vpack.c.bf16 %v1550_v8, %v1549_v42  ;;  %v1543_v21 = vadd.f32 %v1535_v29, %v1399_v20  ;;  %v1789_v1 = vadd.f32 -1.0, %v2182_v15  ;;  %v1404_v48 = vsel %vm1364_vm14, %v3010_v46, %v1783_v7 }
 0x3c1   : > { %v1552_v58 = vmul.f32 0.5, %v1544_v32  ;;  %v1788_v45 = vadd.f32 -1.0, %v2184_v34  ;;  %v2186_v49 = vpop.eup %2185  ;;  %v1403_v55 = vsel %vm1363_vm15, %v3015_v6, %v1782_v19 }
 0x3c2   : > { %1820 = vst [vmem:[%s2555_s30] sm:$0xff] %v1819_v35   ;;  %v1551_v33 = vmul.f32 0.5, %v1543_v21  ;;  %v1538_v56 = vsel %vm1498_vm12, %v3029_v57, %v1789_v1  ;;  %v1791_v26 = vadd.f32 -1.0, %v2186_v49 }
 0x3c3   : > { %v1546_v52 = vadd.f32 %v1538_v56, %v1402_v60  ;;  %v1537_v5 = vsel %vm1497_vm13, %v3031_v40, %v1788_v45 }
 0x3c4   : > { %v2188_v17 = vpop.eup %2187  ;;  %v1824_v10 = vpack.c.bf16 %v1552_v58, %v1551_v33  ;;  %v1545_v3 = vadd.f32 %v1537_v5, %v1401_v63  ;;  %v1540_v40 = vsel %vm1500_vm0, %v3035_v44, %v1791_v26 }
 0x3c5   : > { %v1554_v57 = vmul.f32 0.5, %v1546_v52  ;;  %v1790_v13 = vadd.f32 -1.0, %v2188_v17  ;;  %v1548_v11 = vadd.f32 %v1540_v40, %v1404_v48 }
 0x3c6   : > { %1836 = vst [vmem:[%s2555_s30 + $0x8] sm:$0xff] %v1824_v10   ;;  %v1553_v39 = vmul.f32 0.5, %v1545_v3 }
 0x3c7   : > { %v1539_v25 = vsel %vm1499_vm1, %v3037_v16, %v1790_v13  ;;  %v1556_v2 = vmul.f32 0.5, %v1548_v11 }
 0x3c8   : > { %v1829_v22 = vpack.c.bf16 %v1554_v57, %v1553_v39  ;;  %v1547_v9 = vadd.f32 %v1539_v25, %v1403_v55 }
 0x3ca   : > { %1837 = vst [vmem:[%s2555_s30 + $0x10] sm:$0xff] %v1829_v22   ;;  %v1555_v61 = vmul.f32 0.5, %v1547_v9 }
 0x3cc   : > { %v1834_v31 = vpack.c.bf16 %v1556_v2, %v1555_v61 }
 0x3ce   : > { %1838 = vst [vmem:[%s2555_s30 + $0x18] sm:$0xff] %v1834_v31  }
 0x3cf PF: > { %s1815_s21 = sshll.u32 %s2329_s22, 9  ;;  %s1611_s28 = sshll.u32 %s2555_s30, 4  ;;  %s3090_s28 = int_to_ptr.vmem [resolvable:$true] %s1611_s28 }
 0x3d0   : > { %s3087_s18 = scalar_lea.hbm %s3159_s4, %s1815_s21  ;;  %s3181_s29 = sand.u32 1, %s2305_s16  }
 0x3d1   : > { %s3094_s27 = scalar_lea.sflag [#allocation7], %s3181_s29  ;;  %s2219_s26 = scalar_lea.vmem %s3090_s28, 512 }
 0x3d2   : > { %p2220_p1 = scmp.ne.s32.totalorder %s3090_s28, %s2219_s26  ;;  %p3182_p5 = scmp.ne.s32.totalorder %s3173_s11, 0 }
 0x3d3   : > { %s2352_s22 = smov [#allocation8]  }
 0x3d4   : > { %p2221_p8 = pnand %p2220_p1, %p3182_p5  ;;  %s2223_s6 = sshll.u32 %s2352_s22, 4  ;;  %s2224_s6 = int_to_ptr.vmem [resolvable:$false] %s2223_s6 }
 0x3d5   : > { %s2225_s5 = scalar_lea.vmem %s2224_s6, 1024  ;;  %p2226_p10 = scmp.lt.s32.totalorder %s3090_s28, %s2224_s6 }
 0x3d6   : > { %p2222_p3 = pneg %p2221_p8  ;;  %p2227_p11 = scmp.lt.s32.totalorder %s2225_s5, %s2219_s26 }
 0x3d8   : > { %p2228_p6 = por %p2227_p11, %p2226_p10 }
 0x3da   : > { %p2229_p9 = pnand %p2228_p6, %p2222_p3 }
 0x3dc   : > { %2232 = shalt.err (!%p2229_p9)
}
 0x3dd   : > { %s2233_s12 = scalar_lea.hbm %s3087_s18, 512  ;;  %s2237_s10 = scalar_lea.hbm %s3159_s4, 2048 }
 0x3de   : > { %p2234_p13 = scmp.ne.s32.totalorder %s3087_s18, %s2233_s12  ;;  %p2238_p7 = scmp.lt.u32.totalorder %s3087_s18, %s3159_s4 }
 0x3df   : > { %p2239_p4 = scmp.lt.u32.totalorder %s2237_s10, %s2233_s12  ;;  %p2241_p1 = scmp.lt.u32.totalorder %s2233_s12, %s3087_s18 }
 0x3e0   : > { %p2235_p12 = pnand %p2234_p13, %p3182_p5 }
 0x3e1   : > { %p2240_p0 = por %p2239_p4, %p2238_p7 }
 0x3e2   : > { %p2236_p2 = pneg %p2235_p12 }
 0x3e3   : > { %p2242_p8 = por %p2241_p1, %p2240_p0 }
 0x3e5   : > { %p2243_p3 = pnand %p2242_p8, %p2236_p2 }
 0x3e7   : > { %2246 = shalt.err (!%p2243_p3)
}
 0x3e8   : > { %s2353_s23 = smov 64   ;;  %s2354_s3 = smov 4  }
 0x3e9   : > { %1913 = dma.vmem_to_hbm [thread:$0]  (%p3182_p5), %s3090_s28, 512, %s3087_s18, %s3094_s27, %s2353_s23, %s2353_s23, %s2354_s3  }
 0x3ea PF: > { %p1924_p10 = scmp.ge.s32.totalorder %s2341_s25, 2  ;;  %s1626_s21 = sand.u32 1, %s2301_s15  }
 0x3eb   : > { %p3183_p11 = scmp.ne.s32.totalorder %s3176_s14, 0  ;;  %s1627_s24 = scalar_lea.sflag [#allocation7], %s1626_s21 }
 0x3ed   : > { %p1920_p6 = pnand %p1924_p10, %p3183_p11 }
 0x3ef   : > { %2296 = dma.done.wait (!%p1920_p6), %s1627_s24, 512  }
 0x3f0   : > { %2298 = vsyncadd (!%p1920_p6), %s1627_s24, 4294966784  ;;  %s20_s25 = sadd.s32 1, %s2341_s25   ;;  %s3184_s13 = sld [smem:[#allocation15_spill]] }
 0x3f1   : > { %p17_p9 = scmp.ge.s32.totalorder %s20_s25, 10   ;;  %s3185_s11 = sld [smem:[#allocation16_spill]] }
 0x3f2   : > { %s3186_s21 = sld [smem:[#allocation11_spill]]  ;;  %s3187_s22 = sld [smem:[#allocation12_spill]] }
 0x3f3   : > { %s3188_s23 = sld [smem:[#allocation13_spill]]  ;;  %s3189_s24 = sld [smem:[#allocation14_spill]] }
 0x3f4   : > { %s3190_s15 = smov %s2305_s16  ;;  %s3191_s16 = smov %s2309_s17 }
 0x3f5   : > { %s3193_s18 = smov %s2317_s19  ;;  %s3194_s19 = smov %s2321_s20 }
 0x3f6   : > { %s3192_s17 = smov %s3184_s13  ;;  %19 = sbr.rel (!%p17_p9) target bundleno = 11 (0xb), region = 101 }
 0x3f7   : > { %s3195_s20 = smov %s3185_s11 }
 0x3fd   :  { %1632 = vsyncpa [#allocation6], 1 }
 0x3fe   :  { %1634 = vsyncpa [#allocation6 + $0x1], 1 }
 0x3ff   :  { %1635 = vsyncpa [#allocation7], 1 }
 0x400   :  { %1637 = vsyncpa [#allocation7 + $0x1], 1 }

</bundles_post_ra>
